<compile_context>
chip_gen: v7x
topology: tpu7x:2x2x1
jax: 0.10.0
libtpu: 0.0.40
codegen_flags: <defaults>
</compile_context>

<pallas_src>
import functools

import jax
import jax.numpy as jnp
from jax import lax
from jax.experimental import pallas as pl
from jax.experimental.pallas import tpu as pltpu

INPUT_DIM = 398
K_PAD = 512                      # padded input feature dim (MXU-aligned)
H1, H2, H3 = 512, 256, 128
HEAD_DIMS = {"emotional": 4, "belief": 64, "intention": 32, "attention": 16}
# column layout of the fused head output slab
EMO_OFF, BEL_OFF, INT_OFF, ATT_OFF = 0, 4, 68, 100
HEAD_TOTAL = 116
OUT_PAD = 128                    # lane-dense output width
TB_MAX = 1024                    # max batch tile (fits comfortably in 64 MiB VMEM on v7x)
LN_EPS = 1e-5


def _round_up(n, m):
    return ((n + m - 1) // m) * m


def _pick_tile(batch, tb_max):
    """Ragged-friendly tile choice: minimal padding, Bp % TB == 0, TB % 16 == 0."""
    num_tiles = max(1, -(-batch // tb_max))
    tb = _round_up(-(-batch // num_tiles), 16)
    return tb, num_tiles * tb


def _gelu_exact(x):
    # PyTorch nn.GELU default: 0.5 * x * (1 + erf(x / sqrt(2)))
    return 0.5 * x * (1.0 + lax.erf(x * 0.7071067811865476))


def _layernorm(x, gamma, beta):
    mean = jnp.mean(x, axis=-1, keepdims=True)
    centered = x - mean
    var = jnp.mean(centered * centered, axis=-1, keepdims=True)
    inv = lax.rsqrt(var + LN_EPS)
    return centered * inv * gamma + beta


def tom_kernel(
    x_ref,
    w1_ref, b1_ref, g1_ref, bt1_ref,
    w2_ref, b2_ref, g2_ref, bt2_ref,
    w3_ref, b3_ref,
    wh_ref, bh_ref, sb_ref,
    out_ref,
):
    # mental_state_predictor (bf16 matmul operands, f32 accumulation / pointwise math)
    x = x_ref[...]                                             # bf16 (TB, 512)
    h = jnp.dot(x, w1_ref[...], preferred_element_type=jnp.float32) + b1_ref[...]
    h = _gelu_exact(_layernorm(h, g1_ref[...], bt1_ref[...]))
    # Dropout(0.1): identity in inference mode.
    h = jnp.dot(h.astype(jnp.bfloat16), w2_ref[...],
                preferred_element_type=jnp.float32) + b2_ref[...]
    h = _gelu_exact(_layernorm(h, g2_ref[...], bt2_ref[...]))
    ms = jnp.dot(h.astype(jnp.bfloat16), w3_ref[...],
                 preferred_element_type=jnp.float32) + b3_ref[...]

    # fused perspective heads: one 128->128 matmul, lane-dense (TB, 128) result
    z = jnp.dot(ms.astype(jnp.bfloat16), wh_ref[...],
                preferred_element_type=jnp.float32) + bh_ref[...]

    col = lax.broadcasted_iota(jnp.int32, z.shape, 1)

    # One tanh pass covers both the sigmoid columns (emotional/attention, via
    # sigmoid(z) = 0.5*(1+tanh(z/2))) and the tanh columns (belief).
    sig_mask = (col < BEL_OFF) | ((col >= ATT_OFF) & (col < HEAD_TOTAL))
    t = jnp.tanh(jnp.where(sig_mask, 0.5 * z, z))
    sig = 0.5 * (1.0 + t)

    # softmax restricted to intention columns [INT_OFF, ATT_OFF): exact normalization.
    int_mask = (col >= INT_OFF) & (col < ATT_OFF)
    zmax = jnp.max(jnp.where(int_mask, z, jnp.float32(-1e30)), axis=-1, keepdims=True)
    ez = jnp.where(int_mask, jnp.exp(z - zmax), 0.0)
    denom = jnp.sum(ez, axis=-1, keepdims=True)
    sm = ez / denom

    emo = sig * sb_ref[...]   # social_bias scaling (padded with 1s beyond col 4)

    out = jnp.where(
        col < BEL_OFF, emo,
        jnp.where(col < INT_OFF, t,
                  jnp.where(col < ATT_OFF, sm,
                            jnp.where(col < HEAD_TOTAL, sig, 0.0))))
    out_ref[...] = out


def prepare_params(params):
    """One-time weight prep (pad / fuse / cast). Call once, reuse across forwards."""
    pad_cols = OUT_PAD - HEAD_TOTAL
    wh = jnp.concatenate(
        [params["we"], params["wb"], params["wi"], params["wa"],
         jnp.zeros((H3, pad_cols), jnp.float32)], axis=1)
    bh = jnp.concatenate(
        [params["be"], params["bb"], params["bi"], params["ba"],
         jnp.zeros((1, pad_cols), jnp.float32)], axis=1)
    sb = jnp.concatenate(
        [params["social_bias"],
         jnp.ones((1, OUT_PAD - HEAD_DIMS["emotional"]), jnp.float32)], axis=1)
    return {
        "w1": jnp.pad(params["w1"], ((0, K_PAD - INPUT_DIM), (0, 0))).astype(jnp.bfloat16),
        "b1": params["b1"], "g1": params["g1"], "bt1": params["bt1"],
        "w2": params["w2"].astype(jnp.bfloat16),
        "b2": params["b2"], "g2": params["g2"], "bt2": params["bt2"],
        "w3": params["w3"].astype(jnp.bfloat16),
        "b3": params["b3"],
        "wh": wh.astype(jnp.bfloat16),
        "bh": bh,
        "sb": sb,
    }


@functools.partial(jax.jit, static_argnames=("tb",))
def theory_of_mind_forward(social_context, prep, *, tb=TB_MAX):
    if social_context.ndim == 1:
        social_context = social_context[None, :]
    B = social_context.shape[0]
    TB, Bp = _pick_tile(B, tb)

    # zero-pad batch (to tile multiple) and feature dim 398 -> 512; bf16 halves input DMA
    x = jnp.pad(social_context.astype(jnp.bfloat16),
                ((0, Bp - B), (0, K_PAD - INPUT_DIM)))

    inputs = (
        x,
        prep["w1"], prep["b1"], prep["g1"], prep["bt1"],
        prep["w2"], prep["b2"], prep["g2"], prep["bt2"],
        prep["w3"], prep["b3"],
        prep["wh"], prep["bh"], prep["sb"],
    )

    def const_spec(shape):
        return pl.BlockSpec(shape, lambda i: (0, 0))

    in_specs = [
        pl.BlockSpec((TB, K_PAD), lambda i: (i, 0)),          # x, batch-tiled
        const_spec((K_PAD, H1)), const_spec((1, H1)), const_spec((1, H1)), const_spec((1, H1)),
        const_spec((H1, H2)), const_spec((1, H2)), const_spec((1, H2)), const_spec((1, H2)),
        const_spec((H2, H3)), const_spec((1, H3)),
        const_spec((H3, OUT_PAD)), const_spec((1, OUT_PAD)), const_spec((1, OUT_PAD)),
    ]

    out_slab = pl.pallas_call(
        tom_kernel,
        out_shape=jax.ShapeDtypeStruct((Bp, OUT_PAD), jnp.float32),
        grid=(Bp // TB,),
        in_specs=in_specs,
        out_specs=pl.BlockSpec((TB, OUT_PAD), lambda i: (i, 0)),
        compiler_params=pltpu.CompilerParams(
            dimension_semantics=("parallel",),
            vmem_limit_bytes=48 << 20,
        ),
    )(*inputs)

    out_slab = out_slab[:B]
    return {
        "emotional": out_slab[:, EMO_OFF:BEL_OFF],
        "belief": out_slab[:, BEL_OFF:INT_OFF],
        "intention": out_slab[:, INT_OFF:ATT_OFF],
        "attention": out_slab[:, ATT_OFF:HEAD_TOTAL],
    }


def init_params(key):
    """Deterministic init mirroring PyTorch default Linear init (U(-1/sqrt(fan_in), +...))."""
    params = {}

    def linear(k, fan_in, fan_out):
        kw, kb = jax.random.split(k)
        bound = 1.0 / (fan_in ** 0.5)
        w = jax.random.uniform(kw, (fan_in, fan_out), jnp.float32, -bound, bound)
        b = jax.random.uniform(kb, (1, fan_out), jnp.float32, -bound, bound)
        return w, b

    keys = jax.random.split(key, 8)
    params["w1"], params["b1"] = linear(keys[0], INPUT_DIM, H1)
    params["g1"] = jnp.ones((1, H1), jnp.float32)
    params["bt1"] = jnp.zeros((1, H1), jnp.float32)
    params["w2"], params["b2"] = linear(keys[1], H1, H2)
    params["g2"] = jnp.ones((1, H2), jnp.float32)
    params["bt2"] = jnp.zeros((1, H2), jnp.float32)
    params["w3"], params["b3"] = linear(keys[2], H2, H3)

    params["we"], params["be"] = linear(keys[3], H3, HEAD_DIMS["emotional"])
    params["wb"], params["bb"] = linear(keys[4], H3, HEAD_DIMS["belief"])
    params["wi"], params["bi"] = linear(keys[5], H3, HEAD_DIMS["intention"])
    params["wa"], params["ba"] = linear(keys[6], H3, HEAD_DIMS["attention"])

    params["social_bias"] = jnp.ones((1, HEAD_DIMS["emotional"]), jnp.float32)
    return params


def _reference_forward(x, params, *, matmul_dtype=jnp.float32):
    """Pure-JAX reference mirroring the PyTorch module in eval mode.

    matmul_dtype=bfloat16 mirrors the kernel's bf16-operand / f32-accumulate dots.
    """
    if x.ndim == 1:
        x = x[None, :]

    def mm(a, w):
        return jnp.dot(a.astype(matmul_dtype), w.astype(matmul_dtype),
                       preferred_element_type=jnp.float32)

    h = mm(x, params["w1"]) + params["b1"]
    h = _gelu_exact(_layernorm(h, params["g1"], params["bt1"]))
    h = mm(h, params["w2"]) + params["b2"]
    h = _gelu_exact(_layernorm(h, params["g2"], params["bt2"]))
    ms = mm(h, params["w3"]) + params["b3"]
    emo = jax.nn.sigmoid(mm(ms, params["we"]) + params["be"]) * params["social_bias"]
    bel = jnp.tanh(mm(ms, params["wb"]) + params["bb"])
    inten = jax.nn.softmax(mm(ms, params["wi"]) + params["bi"], axis=-1)
    att = jax.nn.sigmoid(mm(ms, params["wa"]) + params["ba"])
    return {"emotional": emo, "belief": bel, "intention": inten, "attention": att}


if __name__ == "__main__":
    key = jax.random.PRNGKey(0)
    k_param, k_x = jax.random.split(key)
    params = init_params(k_param)
    prep = prepare_params(params)

    B = 8
    social_context = jax.random.normal(k_x, (B, INPUT_DIM), jnp.float32)

    out = theory_of_mind_forward(social_context, prep)
    out = jax.block_until_ready(out)

    # Shape checks.
    assert out["emotional"].shape == (B, 4)
    assert out["belief"].shape == (B, 64)
    assert out["intention"].shape == (B, 32)
    assert out["attention"].shape == (B, 16)

    # Exact-division softmax: intention rows sum to 1 up to f32 rounding.
    assert jnp.allclose(jnp.sum(out["intention"], axis=-1), 1.0, atol=1e-5)

    # Tight check vs a reference that uses the same bf16-operand / f32-accum matmuls.
    ref_bf16 = _reference_forward(social_context, params, matmul_dtype=jnp.bfloat16)
    for name in ("emotional", "belief", "intention", "attention"):
        assert jnp.allclose(out[name], ref_bf16[name], atol=2e-3, rtol=2e-3), name

    # Looser check vs the full-f32 reference (covers the bf16-operand rounding).
    ref_f32 = _reference_forward(social_context, params, matmul_dtype=jnp.float32)
    for name in ("emotional", "belief", "intention", "attention"):
        assert jnp.allclose(out[name], ref_f32[name], atol=3e-2, rtol=3e-2), name

    print("KERNEL_OK")
</pallas_src>

<mosaic_0001>
module attributes {stable_mosaic.version = 11 : i64} {
  func.func @tom_kernel(%arg0: i32, %arg1: memref<16x512xbf16, #tpu.memory_space<vmem>>, %arg2: memref<512x512xbf16, #tpu.memory_space<vmem>>, %arg3: memref<1x512xf32, #tpu.memory_space<vmem>>, %arg4: memref<1x512xf32, #tpu.memory_space<vmem>>, %arg5: memref<1x512xf32, #tpu.memory_space<vmem>>, %arg6: memref<512x256xbf16, #tpu.memory_space<vmem>>, %arg7: memref<1x256xf32, #tpu.memory_space<vmem>>, %arg8: memref<1x256xf32, #tpu.memory_space<vmem>>, %arg9: memref<1x256xf32, #tpu.memory_space<vmem>>, %arg10: memref<256x128xbf16, #tpu.memory_space<vmem>>, %arg11: memref<1x128xf32, #tpu.memory_space<vmem>>, %arg12: memref<128x128xbf16, #tpu.memory_space<vmem>>, %arg13: memref<1x128xf32, #tpu.memory_space<vmem>>, %arg14: memref<1x128xf32, #tpu.memory_space<vmem>>, %arg15: memref<16x128xf32, #tpu.memory_space<vmem>>) attributes {dimension_semantics = [#tpu.dimension_semantics<parallel>], iteration_bounds = array<i64: 1>, scalar_prefetch = 0 : i64, scratch_operands = 0 : i64, tpu.core_type = #tpu.core_type<tc>, window_params = [{transform_indices = @transform_0, window_bounds = array<i64: 16, 512>}, {pipeline_mode = #tpu.pipeline_mode<synchronous>, transform_indices = @transform_1, window_bounds = array<i64: 512, 512>}, {pipeline_mode = #tpu.pipeline_mode<synchronous>, transform_indices = @transform_2, window_bounds = array<i64: 1, 512>}, {pipeline_mode = #tpu.pipeline_mode<synchronous>, transform_indices = @transform_3, window_bounds = array<i64: 1, 512>}, {pipeline_mode = #tpu.pipeline_mode<synchronous>, transform_indices = @transform_4, window_bounds = array<i64: 1, 512>}, {pipeline_mode = #tpu.pipeline_mode<synchronous>, transform_indices = @transform_5, window_bounds = array<i64: 512, 256>}, {pipeline_mode = #tpu.pipeline_mode<synchronous>, transform_indices = @transform_6, window_bounds = array<i64: 1, 256>}, {pipeline_mode = #tpu.pipeline_mode<synchronous>, transform_indices = @transform_7, window_bounds = array<i64: 1, 256>}, {pipeline_mode = #tpu.pipeline_mode<synchronous>, transform_indices = @transform_8, window_bounds = array<i64: 1, 256>}, {pipeline_mode = #tpu.pipeline_mode<synchronous>, transform_indices = @transform_9, window_bounds = array<i64: 256, 128>}, {pipeline_mode = #tpu.pipeline_mode<synchronous>, transform_indices = @transform_10, window_bounds = array<i64: 1, 128>}, {pipeline_mode = #tpu.pipeline_mode<synchronous>, transform_indices = @transform_11, window_bounds = array<i64: 128, 128>}, {pipeline_mode = #tpu.pipeline_mode<synchronous>, transform_indices = @transform_12, window_bounds = array<i64: 1, 128>}, {pipeline_mode = #tpu.pipeline_mode<synchronous>, transform_indices = @transform_13, window_bounds = array<i64: 1, 128>}, {transform_indices = @transform_14, window_bounds = array<i64: 16, 128>}]} {
    %c0 = arith.constant 0 : index
    %c0_0 = arith.constant 0 : index
    %0 = vector.load %arg1[%c0, %c0_0] : memref<16x512xbf16, #tpu.memory_space<vmem>>, vector<16x512xbf16>
    %c0_1 = arith.constant 0 : index
    %c0_2 = arith.constant 0 : index
    %1 = vector.load %arg2[%c0_1, %c0_2] : memref<512x512xbf16, #tpu.memory_space<vmem>>, vector<512x512xbf16>
    %cst = arith.constant dense<0.000000e+00> : vector<16x512xf32>
    %2 = tpu.matmul %0, %1, %cst {dimension_numbers = #tpu.dot_dimension_numbers<[1], [0], [0], [1], [0, 0, 1, 1], [], []>} : vector<16x512xbf16>, vector<512x512xbf16>, vector<16x512xf32> -> vector<16x512xf32>
    %c0_3 = arith.constant 0 : index
    %c0_4 = arith.constant 0 : index
    %3 = vector.load %arg3[%c0_3, %c0_4] : memref<1x512xf32, #tpu.memory_space<vmem>>, vector<1x512xf32>
    %4 = vector.broadcast %3 : vector<1x512xf32> to vector<16x512xf32>
    %5 = arith.addf %2, %4 : vector<16x512xf32>
    %c0_5 = arith.constant 0 : index
    %c0_6 = arith.constant 0 : index
    %6 = vector.load %arg4[%c0_5, %c0_6] : memref<1x512xf32, #tpu.memory_space<vmem>>, vector<1x512xf32>
    %c0_7 = arith.constant 0 : index
    %c0_8 = arith.constant 0 : index
    %7 = vector.load %arg5[%c0_7, %c0_8] : memref<1x512xf32, #tpu.memory_space<vmem>>, vector<1x512xf32>
    %cst_9 = arith.constant dense<0.000000e+00> : vector<16xf32>
    %8 = vector.multi_reduction <add>, %5, %cst_9 [1] : vector<16x512xf32> to vector<16xf32>
    %9 = vector.shape_cast %8 : vector<16xf32> to vector<16x1xf32>
    %cst_10 = arith.constant 5.120000e+02 : f32
    %10 = vector.broadcast %cst_10 : f32 to vector<16x1xf32>
    %11 = arith.divf %9, %10 : vector<16x1xf32>
    %12 = vector.broadcast %11 : vector<16x1xf32> to vector<16x512xf32>
    %13 = arith.subf %5, %12 : vector<16x512xf32>
    %14 = arith.mulf %13, %13 : vector<16x512xf32>
    %cst_11 = arith.constant dense<0.000000e+00> : vector<16xf32>
    %15 = vector.multi_reduction <add>, %14, %cst_11 [1] : vector<16x512xf32> to vector<16xf32>
    %16 = vector.shape_cast %15 : vector<16xf32> to vector<16x1xf32>
    %cst_12 = arith.constant 5.120000e+02 : f32
    %17 = vector.broadcast %cst_12 : f32 to vector<16x1xf32>
    %18 = arith.divf %16, %17 : vector<16x1xf32>
    %cst_13 = arith.constant 9.99999974E-6 : f32
    %19 = vector.broadcast %cst_13 : f32 to vector<16x1xf32>
    %20 = arith.addf %18, %19 : vector<16x1xf32>
    %21 = math.rsqrt %20 : vector<16x1xf32>
    %22 = vector.broadcast %21 : vector<16x1xf32> to vector<16x512xf32>
    %23 = arith.mulf %13, %22 : vector<16x512xf32>
    %24 = vector.broadcast %6 : vector<1x512xf32> to vector<16x512xf32>
    %25 = arith.mulf %23, %24 : vector<16x512xf32>
    %26 = vector.broadcast %7 : vector<1x512xf32> to vector<16x512xf32>
    %27 = arith.addf %25, %26 : vector<16x512xf32>
    %cst_14 = arith.constant 5.000000e-01 : f32
    %28 = vector.broadcast %cst_14 : f32 to vector<16x512xf32>
    %29 = arith.mulf %28, %27 : vector<16x512xf32>
    %cst_15 = arith.constant 0.707106769 : f32
    %30 = vector.broadcast %cst_15 : f32 to vector<16x512xf32>
    %31 = arith.mulf %27, %30 : vector<16x512xf32>
    %32 = math.erf %31 : vector<16x512xf32>
    %cst_16 = arith.constant 1.000000e+00 : f32
    %33 = vector.broadcast %cst_16 : f32 to vector<16x512xf32>
    %34 = arith.addf %33, %32 : vector<16x512xf32>
    %35 = arith.mulf %29, %34 : vector<16x512xf32>
    %36 = arith.truncf %35 : vector<16x512xf32> to vector<16x512xbf16>
    %c0_17 = arith.constant 0 : index
    %c0_18 = arith.constant 0 : index
    %37 = vector.load %arg6[%c0_17, %c0_18] : memref<512x256xbf16, #tpu.memory_space<vmem>>, vector<512x256xbf16>
    %cst_19 = arith.constant dense<0.000000e+00> : vector<16x256xf32>
    %38 = tpu.matmul %36, %37, %cst_19 {dimension_numbers = #tpu.dot_dimension_numbers<[1], [0], [0], [1], [0, 0, 1, 1], [], []>} : vector<16x512xbf16>, vector<512x256xbf16>, vector<16x256xf32> -> vector<16x256xf32>
    %c0_20 = arith.constant 0 : index
    %c0_21 = arith.constant 0 : index
    %39 = vector.load %arg7[%c0_20, %c0_21] : memref<1x256xf32, #tpu.memory_space<vmem>>, vector<1x256xf32>
    %40 = vector.broadcast %39 : vector<1x256xf32> to vector<16x256xf32>
    %41 = arith.addf %38, %40 : vector<16x256xf32>
    %c0_22 = arith.constant 0 : index
    %c0_23 = arith.constant 0 : index
    %42 = vector.load %arg8[%c0_22, %c0_23] : memref<1x256xf32, #tpu.memory_space<vmem>>, vector<1x256xf32>
    %c0_24 = arith.constant 0 : index
    %c0_25 = arith.constant 0 : index
    %43 = vector.load %arg9[%c0_24, %c0_25] : memref<1x256xf32, #tpu.memory_space<vmem>>, vector<1x256xf32>
    %cst_26 = arith.constant dense<0.000000e+00> : vector<16xf32>
    %44 = vector.multi_reduction <add>, %41, %cst_26 [1] : vector<16x256xf32> to vector<16xf32>
    %45 = vector.shape_cast %44 : vector<16xf32> to vector<16x1xf32>
    %cst_27 = arith.constant 2.560000e+02 : f32
    %46 = vector.broadcast %cst_27 : f32 to vector<16x1xf32>
    %47 = arith.divf %45, %46 : vector<16x1xf32>
    %48 = vector.broadcast %47 : vector<16x1xf32> to vector<16x256xf32>
    %49 = arith.subf %41, %48 : vector<16x256xf32>
    %50 = arith.mulf %49, %49 : vector<16x256xf32>
    %cst_28 = arith.constant dense<0.000000e+00> : vector<16xf32>
    %51 = vector.multi_reduction <add>, %50, %cst_28 [1] : vector<16x256xf32> to vector<16xf32>
    %52 = vector.shape_cast %51 : vector<16xf32> to vector<16x1xf32>
    %cst_29 = arith.constant 2.560000e+02 : f32
    %53 = vector.broadcast %cst_29 : f32 to vector<16x1xf32>
    %54 = arith.divf %52, %53 : vector<16x1xf32>
    %cst_30 = arith.constant 9.99999974E-6 : f32
    %55 = vector.broadcast %cst_30 : f32 to vector<16x1xf32>
    %56 = arith.addf %54, %55 : vector<16x1xf32>
    %57 = math.rsqrt %56 : vector<16x1xf32>
    %58 = vector.broadcast %57 : vector<16x1xf32> to vector<16x256xf32>
    %59 = arith.mulf %49, %58 : vector<16x256xf32>
    %60 = vector.broadcast %42 : vector<1x256xf32> to vector<16x256xf32>
    %61 = arith.mulf %59, %60 : vector<16x256xf32>
    %62 = vector.broadcast %43 : vector<1x256xf32> to vector<16x256xf32>
    %63 = arith.addf %61, %62 : vector<16x256xf32>
    %cst_31 = arith.constant 5.000000e-01 : f32
    %64 = vector.broadcast %cst_31 : f32 to vector<16x256xf32>
    %65 = arith.mulf %64, %63 : vector<16x256xf32>
    %cst_32 = arith.constant 0.707106769 : f32
    %66 = vector.broadcast %cst_32 : f32 to vector<16x256xf32>
    %67 = arith.mulf %63, %66 : vector<16x256xf32>
    %68 = math.erf %67 : vector<16x256xf32>
    %cst_33 = arith.constant 1.000000e+00 : f32
    %69 = vector.broadcast %cst_33 : f32 to vector<16x256xf32>
    %70 = arith.addf %69, %68 : vector<16x256xf32>
    %71 = arith.mulf %65, %70 : vector<16x256xf32>
    %72 = arith.truncf %71 : vector<16x256xf32> to vector<16x256xbf16>
    %c0_34 = arith.constant 0 : index
    %c0_35 = arith.constant 0 : index
    %73 = vector.load %arg10[%c0_34, %c0_35] : memref<256x128xbf16, #tpu.memory_space<vmem>>, vector<256x128xbf16>
    %cst_36 = arith.constant dense<0.000000e+00> : vector<16x128xf32>
    %74 = tpu.matmul %72, %73, %cst_36 {dimension_numbers = #tpu.dot_dimension_numbers<[1], [0], [0], [1], [0, 0, 1, 1], [], []>} : vector<16x256xbf16>, vector<256x128xbf16>, vector<16x128xf32> -> vector<16x128xf32>
    %c0_37 = arith.constant 0 : index
    %c0_38 = arith.constant 0 : index
    %75 = vector.load %arg11[%c0_37, %c0_38] : memref<1x128xf32, #tpu.memory_space<vmem>>, vector<1x128xf32>
    %76 = vector.broadcast %75 : vector<1x128xf32> to vector<16x128xf32>
    %77 = arith.addf %74, %76 : vector<16x128xf32>
    %78 = arith.truncf %77 : vector<16x128xf32> to vector<16x128xbf16>
    %c0_39 = arith.constant 0 : index
    %c0_40 = arith.constant 0 : index
    %79 = vector.load %arg12[%c0_39, %c0_40] : memref<128x128xbf16, #tpu.memory_space<vmem>>, vector<128x128xbf16>
    %cst_41 = arith.constant dense<0.000000e+00> : vector<16x128xf32>
    %80 = tpu.matmul %78, %79, %cst_41 {dimension_numbers = #tpu.dot_dimension_numbers<[1], [0], [0], [1], [0, 0, 1, 1], [], []>} : vector<16x128xbf16>, vector<128x128xbf16>, vector<16x128xf32> -> vector<16x128xf32>
    %c0_42 = arith.constant 0 : index
    %c0_43 = arith.constant 0 : index
    %81 = vector.load %arg13[%c0_42, %c0_43] : memref<1x128xf32, #tpu.memory_space<vmem>>, vector<1x128xf32>
    %82 = vector.broadcast %81 : vector<1x128xf32> to vector<16x128xf32>
    %83 = arith.addf %80, %82 : vector<16x128xf32>
    %84 = tpu.iota {dimensions = array<i32: 1>} : vector<16x128xi32>
    %c4_i32 = arith.constant 4 : i32
    %85 = vector.broadcast %c4_i32 : i32 to vector<16x128xi32>
    %86 = arith.cmpi slt, %84, %85 : vector<16x128xi32>
    %c100_i32 = arith.constant 100 : i32
    %87 = vector.broadcast %c100_i32 : i32 to vector<16x128xi32>
    %88 = arith.cmpi sge, %84, %87 : vector<16x128xi32>
    %c116_i32 = arith.constant 116 : i32
    %89 = vector.broadcast %c116_i32 : i32 to vector<16x128xi32>
    %90 = arith.cmpi slt, %84, %89 : vector<16x128xi32>
    %91 = arith.andi %88, %90 : vector<16x128xi1>
    %92 = arith.ori %86, %91 : vector<16x128xi1>
    %cst_44 = arith.constant 5.000000e-01 : f32
    %93 = vector.broadcast %cst_44 : f32 to vector<16x128xf32>
    %94 = arith.mulf %93, %83 : vector<16x128xf32>
    %95 = arith.select %92, %94, %83 : vector<16x128xi1>, vector<16x128xf32>
    %96 = math.tanh %95 : vector<16x128xf32>
    %cst_45 = arith.constant 1.000000e+00 : f32
    %97 = vector.broadcast %cst_45 : f32 to vector<16x128xf32>
    %98 = arith.addf %97, %96 : vector<16x128xf32>
    %cst_46 = arith.constant 5.000000e-01 : f32
    %99 = vector.broadcast %cst_46 : f32 to vector<16x128xf32>
    %100 = arith.mulf %99, %98 : vector<16x128xf32>
    %c68_i32 = arith.constant 68 : i32
    %101 = vector.broadcast %c68_i32 : i32 to vector<16x128xi32>
    %102 = arith.cmpi sge, %84, %101 : vector<16x128xi32>
    %c100_i32_47 = arith.constant 100 : i32
    %103 = vector.broadcast %c100_i32_47 : i32 to vector<16x128xi32>
    %104 = arith.cmpi slt, %84, %103 : vector<16x128xi32>
    %105 = arith.andi %102, %104 : vector<16x128xi1>
    %cst_48 = arith.constant -1.000000e+30 : f32
    %106 = vector.broadcast %cst_48 : f32 to vector<16x128xf32>
    %107 = arith.select %105, %83, %106 : vector<16x128xi1>, vector<16x128xf32>
    %cst_49 = arith.constant dense<0xFF800000> : vector<16xf32>
    %108 = vector.multi_reduction <maximumf>, %107, %cst_49 [1] : vector<16x128xf32> to vector<16xf32>
    %109 = vector.shape_cast %108 : vector<16xf32> to vector<16x1xf32>
    %110 = vector.broadcast %109 : vector<16x1xf32> to vector<16x128xf32>
    %111 = arith.subf %83, %110 : vector<16x128xf32>
    %112 = math.exp %111 : vector<16x128xf32>
    %cst_50 = arith.constant 0.000000e+00 : f32
    %113 = vector.broadcast %cst_50 : f32 to vector<16x128xf32>
    %114 = arith.select %105, %112, %113 : vector<16x128xi1>, vector<16x128xf32>
    %cst_51 = arith.constant dense<0.000000e+00> : vector<16xf32>
    %115 = vector.multi_reduction <add>, %114, %cst_51 [1] : vector<16x128xf32> to vector<16xf32>
    %116 = vector.shape_cast %115 : vector<16xf32> to vector<16x1xf32>
    %117 = vector.broadcast %116 : vector<16x1xf32> to vector<16x128xf32>
    %118 = arith.divf %114, %117 : vector<16x128xf32>
    %c0_52 = arith.constant 0 : index
    %c0_53 = arith.constant 0 : index
    %119 = vector.load %arg14[%c0_52, %c0_53] : memref<1x128xf32, #tpu.memory_space<vmem>>, vector<1x128xf32>
    %120 = vector.broadcast %119 : vector<1x128xf32> to vector<16x128xf32>
    %121 = arith.mulf %100, %120 : vector<16x128xf32>
    %c4_i32_54 = arith.constant 4 : i32
    %122 = vector.broadcast %c4_i32_54 : i32 to vector<16x128xi32>
    %123 = arith.cmpi slt, %84, %122 : vector<16x128xi32>
    %c68_i32_55 = arith.constant 68 : i32
    %124 = vector.broadcast %c68_i32_55 : i32 to vector<16x128xi32>
    %125 = arith.cmpi slt, %84, %124 : vector<16x128xi32>
    %c100_i32_56 = arith.constant 100 : i32
    %126 = vector.broadcast %c100_i32_56 : i32 to vector<16x128xi32>
    %127 = arith.cmpi slt, %84, %126 : vector<16x128xi32>
    %c116_i32_57 = arith.constant 116 : i32
    %128 = vector.broadcast %c116_i32_57 : i32 to vector<16x128xi32>
    %129 = arith.cmpi slt, %84, %128 : vector<16x128xi32>
    %cst_58 = arith.constant 0.000000e+00 : f32
    %130 = vector.broadcast %cst_58 : f32 to vector<16x128xf32>
    %131 = arith.select %129, %100, %130 : vector<16x128xi1>, vector<16x128xf32>
    %132 = arith.select %127, %118, %131 : vector<16x128xi1>, vector<16x128xf32>
    %133 = arith.select %125, %96, %132 : vector<16x128xi1>, vector<16x128xf32>
    %134 = arith.select %123, %121, %133 : vector<16x128xi1>, vector<16x128xf32>
    %c0_59 = arith.constant 0 : index
    %c0_60 = arith.constant 0 : index
    %135 = vector.load %arg15[%c0_59, %c0_60] : memref<16x128xf32, #tpu.memory_space<vmem>>, vector<16x128xf32>
    tpu.vector_store %arg15[%c0_59, %c0_60], %134 {strides = array<i32>} : memref<16x128xf32, #tpu.memory_space<vmem>>, vector<16x128xf32>,
    return
  }
  func.func @transform_0(%arg0: i32) -> (i32, i32) {
    %c0_i32 = arith.constant 0 : i32
    %c0_i32_0 = arith.constant 0 : i32
    return %arg0, %c0_i32 : i32, i32
  }
  func.func @transform_1(%arg0: i32) -> (i32, i32) {
    %c0_i32 = arith.constant 0 : i32
    %c0_i32_0 = arith.constant 0 : i32
    %c0_i32_1 = arith.constant 0 : i32
    return %c0_i32, %c0_i32_0 : i32, i32
  }
  func.func @transform_2(%arg0: i32) -> (i32, i32) {
    %c0_i32 = arith.constant 0 : i32
    %c0_i32_0 = arith.constant 0 : i32
    %c0_i32_1 = arith.constant 0 : i32
    return %c0_i32, %c0_i32_0 : i32, i32
  }
  func.func @transform_3(%arg0: i32) -> (i32, i32) {
    %c0_i32 = arith.constant 0 : i32
    %c0_i32_0 = arith.constant 0 : i32
    %c0_i32_1 = arith.constant 0 : i32
    return %c0_i32, %c0_i32_0 : i32, i32
  }
  func.func @transform_4(%arg0: i32) -> (i32, i32) {
    %c0_i32 = arith.constant 0 : i32
    %c0_i32_0 = arith.constant 0 : i32
    %c0_i32_1 = arith.constant 0 : i32
    return %c0_i32, %c0_i32_0 : i32, i32
  }
  func.func @transform_5(%arg0: i32) -> (i32, i32) {
    %c0_i32 = arith.constant 0 : i32
    %c0_i32_0 = arith.constant 0 : i32
    %c0_i32_1 = arith.constant 0 : i32
    return %c0_i32, %c0_i32_0 : i32, i32
  }
  func.func @transform_6(%arg0: i32) -> (i32, i32) {
    %c0_i32 = arith.constant 0 : i32
    %c0_i32_0 = arith.constant 0 : i32
    %c0_i32_1 = arith.constant 0 : i32
    return %c0_i32, %c0_i32_0 : i32, i32
  }
  func.func @transform_7(%arg0: i32) -> (i32, i32) {
    %c0_i32 = arith.constant 0 : i32
    %c0_i32_0 = arith.constant 0 : i32
    %c0_i32_1 = arith.constant 0 : i32
    return %c0_i32, %c0_i32_0 : i32, i32
  }
  func.func @transform_8(%arg0: i32) -> (i32, i32) {
    %c0_i32 = arith.constant 0 : i32
    %c0_i32_0 = arith.constant 0 : i32
    %c0_i32_1 = arith.constant 0 : i32
    return %c0_i32, %c0_i32_0 : i32, i32
  }
  func.func @transform_9(%arg0: i32) -> (i32, i32) {
    %c0_i32 = arith.constant 0 : i32
    %c0_i32_0 = arith.constant 0 : i32
    %c0_i32_1 = arith.constant 0 : i32
    return %c0_i32, %c0_i32_0 : i32, i32
  }
  func.func @transform_10(%arg0: i32) -> (i32, i32) {
    %c0_i32 = arith.constant 0 : i32
    %c0_i32_0 = arith.constant 0 : i32
    %c0_i32_1 = arith.constant 0 : i32
    return %c0_i32, %c0_i32_0 : i32, i32
  }
  func.func @transform_11(%arg0: i32) -> (i32, i32) {
    %c0_i32 = arith.constant 0 : i32
    %c0_i32_0 = arith.constant 0 : i32
    %c0_i32_1 = arith.constant 0 : i32
    return %c0_i32, %c0_i32_0 : i32, i32
  }
  func.func @transform_12(%arg0: i32) -> (i32, i32) {
    %c0_i32 = arith.constant 0 : i32
    %c0_i32_0 = arith.constant 0 : i32
    %c0_i32_1 = arith.constant 0 : i32
    return %c0_i32, %c0_i32_0 : i32, i32
  }
  func.func @transform_13(%arg0: i32) -> (i32, i32) {
    %c0_i32 = arith.constant 0 : i32
    %c0_i32_0 = arith.constant 0 : i32
    %c0_i32_1 = arith.constant 0 : i32
    return %c0_i32, %c0_i32_0 : i32, i32
  }
  func.func @transform_14(%arg0: i32) -> (i32, i32) {
    %c0_i32 = arith.constant 0 : i32
    %c0_i32_0 = arith.constant 0 : i32
    return %arg0, %c0_i32 : i32, i32
  }
}

</mosaic_0001>

<bundles_post_ra>
// kernel: theory_of_mind_forward.1
= control target key start
LH: loop header
LB: loop body
LE: loop exit
PB: predicated region body
PF: predicated region fallthrough
CT: control target
= control target key end

     0   :  { %19 = vsyncpa [#allocation3], 0  ;;  %s3477_s0 = inlined_call_operand.vmem [shape: bf16[16,512], index: 0, kind: input, shape index: {}]   ;;  %s3478_s1 = inlined_call_operand.hbm [shape: bf16[512,512], index: 1, kind: input, shape index: {}]   ;;  %s3479_s2 = inlined_call_operand.vmem [shape: f32[1,512], index: 2, kind: input, shape index: {}]   ;;  %s3480_s3 = inlined_call_operand.vmem [shape: f32[1,512], index: 3, kind: input, shape index: {}]   ;;  %s3481_s4 = inlined_call_operand.vmem [shape: f32[1,512], index: 4, kind: input, shape index: {}]   ;;  %s3482_s5 = inlined_call_operand.hbm [shape: bf16[512,256], index: 5, kind: input, shape index: {}]   ;;  %s3483_s6 = inlined_call_operand.vmem [shape: f32[1,256], index: 6, kind: input, shape index: {}]   ;;  %s3484_s7 = inlined_call_operand.hbm [shape: f32[1,256], index: 7, kind: input, shape index: {}]   ;;  %s3485_s8 = inlined_call_operand.hbm [shape: f32[1,256], index: 8, kind: input, shape index: {}]   ;;  %s3486_s9 = inlined_call_operand.vmem [shape: bf16[256,128], index: 9, kind: input, shape index: {}]   ;;  %s3487_s10 = inlined_call_operand.hbm [shape: f32[1,128], index: 10, kind: input, shape index: {}]   ;;  %s3488_s11 = inlined_call_operand.hbm [shape: bf16[128,128], index: 11, kind: input, shape index: {}]   ;;  %s3489_s12 = inlined_call_operand.hbm [shape: f32[1,128], index: 12, kind: input, shape index: {}]   ;;  %s3490_s13 = inlined_call_operand.hbm [shape: f32[1,128], index: 13, kind: input, shape index: {}]   ;;  %s3491_s14 = inlined_call_operand.vmem [shape: f32[16,128], index: 14, kind: output, shape index: {}]  }
   0x1   :  { %20 = vsyncpa [#allocation5], 0 }
   0x2   :  { %21 = vsyncpa [#allocation8], 0 }
   0x3   :  { %22 = vsyncpa [#allocation11], 0 }
   0x4   :  { %23 = vsyncpa [#allocation14], 0  ;;  %s3081_s29 = smov [#allocation4]   ;;  %s2895_s17 = scalar_lea.hbm %s3482_s5, 8192 }
   0x5   :  { %s49_s30 = sshll.u32 %s3081_s29, 4  ;;  %p2896_p0 = scmp.ne.s32.totalorder %s3482_s5, %s2895_s17  ;;  %s50_s30 = int_to_ptr.vmem [resolvable:$true] %s49_s30 }
   0x6   :  { %p2899_p1 = scmp.lt.u32.totalorder %s2895_s17, %s3482_s5 }
   0x8   :  { %p2901_p2 = pnand %p2899_p1, %p2896_p0 }
   0xa   :  { %2904 = shalt.err (!%p2901_p2)
}
   0xb   :  { %s2905_s22 = scalar_lea.vmem %s50_s30, 8192  ;;  %p2910_p4 = scmp.lt.s32.totalorder %s50_s30, %s50_s30 }
   0xc   :  { %p2906_p3 = scmp.ne.s32.totalorder %s50_s30, %s2905_s22  ;;  %p2911_p5 = scmp.lt.s32.totalorder %s2905_s22, %s2905_s22 }
   0xe   :  { %p2912_p6 = por %p2911_p5, %p2910_p4 }
  0x10   :  { %p2913_p7 = pnand %p2912_p6, %p2906_p3 }
  0x12   :  { %2916 = shalt.err (!%p2913_p7)
}
  0x13   :  { %s3082_s23 = smov 128   ;;  %s3083_s24 = smov 8  }
  0x14   :  { %55 = dma.hbm_to_vmem [thread:$0]  %s3482_s5, 8192, %s50_s30, [#allocation5], %s3082_s23, %s3082_s23, %s3083_s24  }
  0x15   :  { %s3084_s27 = smov [#allocation7]   ;;  %s3085_s29 = smov [#allocation10]  }
  0x16   :  { %s74_s28 = sshll.u32 %s3084_s27, 4  ;;  %s95_s15 = sshll.u32 %s3085_s29, 4  ;;  %s75_s28 = int_to_ptr.vmem [resolvable:$true] %s74_s28  ;;  %s96_s15 = int_to_ptr.vmem [resolvable:$true] %s95_s15 }
  0x17   :  { %s2917_s18 = scalar_lea.hbm %s3485_s8, 32 }
  0x18   :  { %p2918_p8 = scmp.ne.s32.totalorder %s3485_s8, %s2917_s18  ;;  %p2921_p9 = scmp.lt.u32.totalorder %s2917_s18, %s3485_s8 }
  0x1a   :  { %p2923_p10 = pnand %p2921_p9, %p2918_p8 }
  0x1c   :  { %2926 = shalt.err (!%p2923_p10)
}
  0x1d   :  { %s2927_s5 = scalar_lea.vmem %s75_s28, 32  ;;  %p2932_p12 = scmp.lt.s32.totalorder %s75_s28, %s75_s28 }
  0x1e   :  { %p2928_p11 = scmp.ne.s32.totalorder %s75_s28, %s2927_s5  ;;  %p2933_p13 = scmp.lt.s32.totalorder %s2927_s5, %s2927_s5 }
  0x20   :  { %p2934_p0 = por %p2933_p13, %p2932_p12 }
  0x22   :  { %p2935_p1 = pnand %p2934_p0, %p2928_p11 }
  0x24   :  { %2938 = shalt.err (!%p2935_p1)
}
  0x25   :  { %77 = dma.hbm_to_vmem [thread:$0]  %s3485_s8, 32, %s75_s28, [#allocation8]  }
  0x26   :  { %s2939_s26 = scalar_lea.hbm %s3488_s11, 1024 }
  0x27   :  { %p2940_p2 = scmp.ne.s32.totalorder %s3488_s11, %s2939_s26  ;;  %p2943_p3 = scmp.lt.u32.totalorder %s2939_s26, %s3488_s11 }
  0x29   :  { %p2945_p4 = pnand %p2943_p3, %p2940_p2 }
  0x2b   :  { %2948 = shalt.err (!%p2945_p4)
}
  0x2c   :  { %s2949_s18 = scalar_lea.vmem %s96_s15, 1024  ;;  %p2954_p6 = scmp.lt.s32.totalorder %s96_s15, %s96_s15 }
  0x2d   :  { %p2950_p5 = scmp.ne.s32.totalorder %s96_s15, %s2949_s18  ;;  %p2955_p7 = scmp.lt.s32.totalorder %s2949_s18, %s2949_s18 }
  0x2f   :  { %p2956_p8 = por %p2955_p7, %p2954_p6 }
  0x31   :  { %p2957_p9 = pnand %p2956_p8, %p2950_p5 }
  0x33   :  { %2960 = shalt.err (!%p2957_p9)
}
  0x34   :  { %s3086_s8 = smov 64   ;;  %s3087_s28 = smov 4  }
  0x35   :  { %101 = dma.hbm_to_vmem [thread:$0]  %s3488_s11, 1024, %s96_s15, [#allocation11], %s3086_s8, %s3086_s8, %s3087_s28  }
  0x36   :  { %s3088_s21 = smov [#allocation2]   ;;  %s2961_s23 = scalar_lea.hbm %s3478_s1, 16384 }
  0x37   :  { %s31_s22 = sshll.u32 %s3088_s21, 4  ;;  %p2962_p10 = scmp.ne.s32.totalorder %s3478_s1, %s2961_s23  ;;  %s32_s22 = int_to_ptr.vmem [resolvable:$true] %s31_s22 }
  0x38   :  { %p2965_p11 = scmp.lt.u32.totalorder %s2961_s23, %s3478_s1 }
  0x3a   :  { %p2967_p12 = pnand %p2965_p11, %p2962_p10 }
  0x3c   :  { %2970 = shalt.err (!%p2967_p12)
}
  0x3d   :  { %s2971_s29 = scalar_lea.vmem %s32_s22, 16384  ;;  %p2976_p0 = scmp.lt.s32.totalorder %s32_s22, %s32_s22 }
  0x3e   :  { %p2972_p13 = scmp.ne.s32.totalorder %s32_s22, %s2971_s29  ;;  %p2977_p1 = scmp.lt.s32.totalorder %s2971_s29, %s2971_s29 }
  0x40   :  { %p2978_p2 = por %p2977_p1, %p2976_p0 }
  0x42   :  { %p2979_p3 = pnand %p2978_p2, %p2972_p13 }
  0x44   :  { %2982 = shalt.err (!%p2979_p3)
}
  0x45   :  { %s3089_s11 = smov 256   ;;  %s3090_s15 = smov 16  }
  0x46   :  { %37 = dma.hbm_to_vmem [thread:$0]  %s3478_s1, 16384, %s32_s22, [#allocation3], %s3089_s11, %s3089_s11, %s3090_s15  }
  0x47   :  { %s3091_s18 = smov [#allocation6]   ;;  %s3092_s28 = smov [#allocation9]  }
  0x48   :  { %s64_s8 = sshll.u32 %s3091_s18, 4  ;;  %s86_s19 = sshll.u32 %s3092_s28, 4  ;;  %s65_s8 = int_to_ptr.vmem [resolvable:$true] %s64_s8  ;;  %s87_s19 = int_to_ptr.vmem [resolvable:$true] %s86_s19 }
  0x49   :  { %s2983_s5 = scalar_lea.hbm %s3484_s7, 32 }
  0x4a   :  { %p2984_p4 = scmp.ne.s32.totalorder %s3484_s7, %s2983_s5  ;;  %p2987_p5 = scmp.lt.u32.totalorder %s2983_s5, %s3484_s7 }
  0x4c   :  { %p2989_p6 = pnand %p2987_p5, %p2984_p4 }
  0x4e   :  { %2992 = shalt.err (!%p2989_p6)
}
  0x4f   :  { %s2993_s1 = scalar_lea.vmem %s65_s8, 32  ;;  %p2998_p8 = scmp.lt.s32.totalorder %s65_s8, %s65_s8 }
  0x50   :  { %p2994_p7 = scmp.ne.s32.totalorder %s65_s8, %s2993_s1  ;;  %p2999_p9 = scmp.lt.s32.totalorder %s2993_s1, %s2993_s1 }
  0x52   :  { %p3000_p10 = por %p2999_p9, %p2998_p8 }
  0x54   :  { %p3001_p11 = pnand %p3000_p10, %p2994_p7 }
  0x56   :  { %3004 = shalt.err (!%p3001_p11)
}
  0x57   :  { %67 = dma.hbm_to_vmem [thread:$0]  %s3484_s7, 32, %s65_s8, [#allocation5]  }
  0x58   :  { %s3005_s11 = scalar_lea.hbm %s3487_s10, 16 }
  0x59   :  { %p3006_p12 = scmp.ne.s32.totalorder %s3487_s10, %s3005_s11  ;;  %p3009_p13 = scmp.lt.u32.totalorder %s3005_s11, %s3487_s10 }
  0x5b   :  { %p3011_p0 = pnand %p3009_p13, %p3006_p12 }
  0x5d   :  { %3014 = shalt.err (!%p3011_p0)
}
  0x5e   :  { %s3015_s28 = scalar_lea.vmem %s87_s19, 16  ;;  %s3019_s20 = scalar_lea.vmem %s87_s19, 32 }
  0x5f   :  { %p3016_p1 = scmp.ne.s32.totalorder %s87_s19, %s3015_s28  ;;  %p3020_p2 = scmp.lt.s32.totalorder %s87_s19, %s87_s19 }
  0x60   :  { %p3021_p3 = scmp.lt.s32.totalorder %s3019_s20, %s3015_s28 }
  0x62   :  { %p3022_p4 = por %p3021_p3, %p3020_p2 }
  0x64   :  { %p3023_p5 = pnand %p3022_p4, %p3016_p1 }
  0x66   :  { %3026 = shalt.err (!%p3023_p5)
}
  0x67   :  { %89 = dma.hbm_to_vmem [thread:$0]  %s3487_s10, 16, %s87_s19, [#allocation8]  }
  0x68   :  { %s3093_s21 = smov [#allocation12]   ;;  %s3094_s30 = smov [#allocation13]  }
  0x69   :  { %s108_s5 = sshll.u32 %s3093_s21, 4  ;;  %s118_s23 = sshll.u32 %s3094_s30, 4  ;;  %s109_s5 = int_to_ptr.vmem [resolvable:$true] %s108_s5  ;;  %s119_s23 = int_to_ptr.vmem [resolvable:$true] %s118_s23 }
  0x6a   :  { %s3027_s1 = scalar_lea.hbm %s3489_s12, 16 }
  0x6b   :  { %p3028_p6 = scmp.ne.s32.totalorder %s3489_s12, %s3027_s1  ;;  %p3031_p7 = scmp.lt.u32.totalorder %s3027_s1, %s3489_s12 }
  0x6d   :  { %p3033_p8 = pnand %p3031_p7, %p3028_p6 }
  0x6f   :  { %3036 = shalt.err (!%p3033_p8)
}
  0x70   :  { %s3037_s10 = scalar_lea.vmem %s109_s5, 16  ;;  %s3041_s19 = scalar_lea.vmem %s109_s5, 32 }
  0x71   :  { %p3038_p9 = scmp.ne.s32.totalorder %s109_s5, %s3037_s10  ;;  %p3042_p10 = scmp.lt.s32.totalorder %s109_s5, %s109_s5 }
  0x72   :  { %p3043_p11 = scmp.lt.s32.totalorder %s3041_s19, %s3037_s10 }
  0x74   :  { %p3044_p12 = por %p3043_p11, %p3042_p10 }
  0x76   :  { %p3045_p13 = pnand %p3044_p12, %p3038_p9 }
  0x78   :  { %3048 = shalt.err (!%p3045_p13)
}
  0x79   :  { %111 = dma.hbm_to_vmem [thread:$0]  %s3489_s12, 16, %s109_s5, [#allocation11]  }
  0x7a   :  { %s3049_s18 = scalar_lea.hbm %s3490_s13, 16 }
  0x7b   :  { %p3050_p0 = scmp.ne.s32.totalorder %s3490_s13, %s3049_s18  ;;  %p3053_p1 = scmp.lt.u32.totalorder %s3049_s18, %s3490_s13 }
  0x7d   :  { %p3055_p2 = pnand %p3053_p1, %p3050_p0 }
  0x7f   :  { %3058 = shalt.err (!%p3055_p2)
}
  0x80   :  { %s3059_s21 = scalar_lea.vmem %s119_s23, 16  ;;  %s3063_s30 = scalar_lea.vmem %s119_s23, 32 }
  0x81   :  { %p3060_p3 = scmp.ne.s32.totalorder %s119_s23, %s3059_s21  ;;  %p3064_p4 = scmp.lt.s32.totalorder %s119_s23, %s119_s23 }
  0x82   :  { %p3065_p5 = scmp.lt.s32.totalorder %s3063_s30, %s3059_s21 }
  0x84   :  { %p3066_p6 = por %p3065_p5, %p3064_p4 }
  0x86   :  { %p3067_p7 = pnand %p3066_p6, %p3060_p3 }
  0x88   :  { %3070 = shalt.err (!%p3067_p7)
}
  0x89   :  { %121 = dma.hbm_to_vmem [thread:$0]  %s3490_s13, 16, %s119_s23, [#allocation14]  }
  0x8a   :  { %3071 = dma.done.wait [#allocation3], 16384  }
  0x8b   :  { %3072 = vsyncadd [#allocation3], 4294950912 }
  0x8c   :  { %3073 = dma.done.wait [#allocation5], 8224  }
  0x8d   :  { %3074 = vsyncadd [#allocation5], 4294959072 }
  0x8e   :  { %3075 = dma.done.wait [#allocation8], 48  }
  0x8f   :  { %3076 = vsyncadd [#allocation8], 4294967248 }
  0x90   :  { %3077 = dma.done.wait [#allocation11], 1040  }
  0x91   :  { %3078 = vsyncadd [#allocation11], 4294966256 }
  0x92   :  { %3079 = dma.done.wait [#allocation14], 16  }
  0x93   :  { %3080 = vsyncadd [#allocation14], 4294967280  ;;  %v2533_v0 = vld [vmem:[#allocation2 + $0x4] ss:$16 sps:$4 sm:$0xff]   ;;  %v2535_v1 = vld [vmem:[#allocation2 + $0xc] ss:$16 sps:$4 sm:$0xff]  }
  0x94   :  { %961 = vmatprep.subr.bf16.mxu0 %v2533_v0  ;;  %v2537_v2 = vld [vmem:[#allocation2] ss:$16 sps:$4 sm:$0xff]   ;;  %v2538_v3 = vld [vmem:[#allocation2 + $0x8] ss:$16 sps:$4 sm:$0xff]   ;;  %1047 = vmatprep.subr.bf16.mxu1 %v2535_v1  ;;  %v2539_v4 = vld [vmem:[#allocation2 + $0x24] ss:$16 sps:$4 sm:$0xff]  }
  0x95   :  { %962 = vmatpush1.bf16.msra.mxu0 %v2537_v2  ;;  %1048 = vmatpush1.bf16.msra.mxu1 %v2538_v3  ;;  %v2541_v5 = vld [vmem:[#allocation2 + $0x2c] ss:$16 sps:$4 sm:$0xff]   ;;  %v2543_v6 = vld [vmem:[#allocation2 + $0x20] ss:$16 sps:$4 sm:$0xff]   ;;  %v2544_v7 = vld [vmem:[#allocation2 + $0x28] ss:$16 sps:$4 sm:$0xff]  }
  0x96   :  { %963 = vmatprep.subr.bf16.mxu0 %v2539_v4  ;;  %1049 = vmatprep.subr.bf16.mxu1 %v2541_v5  ;;  %v2545_v8 = vld [vmem:[#allocation2 + $0x44] ss:$16 sps:$4 sm:$0xff]   ;;  %v2547_v9 = vld [vmem:[#allocation2 + $0x4c] ss:$16 sps:$4 sm:$0xff]   ;;  %v2549_v10 = vld [vmem:[#allocation2 + $0x40] ss:$16 sps:$4 sm:$0xff]  }
  0x97   :  { %v2550_v11 = vld [vmem:[#allocation2 + $0x48] ss:$16 sps:$4 sm:$0xff]   ;;  %v2551_v12 = vld [vmem:[#allocation2 + $0x64] ss:$16 sps:$4 sm:$0xff]   ;;  %v2553_v13 = vld [vmem:[#allocation2 + $0x6c] ss:$16 sps:$4 sm:$0xff]  }
  0x98   :  { %v2555_v14 = vld [vmem:[#allocation2 + $0x60] ss:$16 sps:$4 sm:$0xff]   ;;  %v2556_v15 = vld [vmem:[#allocation2 + $0x68] ss:$16 sps:$4 sm:$0xff]   ;;  %v2557_v16 = vld [vmem:[#allocation2 + $0x84] ss:$16 sps:$4 sm:$0xff]  }
  0x99   :  { %964 = vmatpush1.bf16.msra.mxu0 %v2543_v6  ;;  %1050 = vmatpush1.bf16.msra.mxu1 %v2544_v7  ;;  %v2559_v17 = vld [vmem:[#allocation2 + $0x8c] ss:$16 sps:$4 sm:$0xff]   ;;  %v2561_v18 = vld [vmem:[#allocation2 + $0x80] ss:$16 sps:$4 sm:$0xff]   ;;  %v2562_v19 = vld [vmem:[#allocation2 + $0x88] ss:$16 sps:$4 sm:$0xff]  }
  0x9a   :  { %965 = vmatprep.subr.bf16.mxu0 %v2545_v8  ;;  %1051 = vmatprep.subr.bf16.mxu1 %v2547_v9  ;;  %v2563_v20 = vld [vmem:[#allocation2 + $0xa4] ss:$16 sps:$4 sm:$0xff]   ;;  %v2565_v21 = vld [vmem:[#allocation2 + $0xac] ss:$16 sps:$4 sm:$0xff]   ;;  %v2567_v22 = vld [vmem:[#allocation2 + $0xa0] ss:$16 sps:$4 sm:$0xff]  }
  0x9b   :  { %v2568_v23 = vld [vmem:[#allocation2 + $0xa8] ss:$16 sps:$4 sm:$0xff]   ;;  %v2569_v24 = vld [vmem:[#allocation2 + $0xc4] ss:$16 sps:$4 sm:$0xff]   ;;  %v2571_v25 = vld [vmem:[#allocation2 + $0xcc] ss:$16 sps:$4 sm:$0xff]  }
  0x9c   :  { %v2573_v26 = vld [vmem:[#allocation2 + $0xc0] ss:$16 sps:$4 sm:$0xff]   ;;  %v2574_v27 = vld [vmem:[#allocation2 + $0xc8] ss:$16 sps:$4 sm:$0xff]   ;;  %v2575_v28 = vld [vmem:[#allocation2 + $0xe4] ss:$16 sps:$4 sm:$0xff]  }
  0x9d   :  { %966 = vmatpush1.bf16.msra.mxu0 %v2549_v10  ;;  %1052 = vmatpush1.bf16.msra.mxu1 %v2550_v11  ;;  %v2577_v29 = vld [vmem:[#allocation2 + $0xec] ss:$16 sps:$4 sm:$0xff]   ;;  %v2579_v30 = vld [vmem:[#allocation2 + $0xe0] ss:$16 sps:$4 sm:$0xff]   ;;  %v2580_v31 = vld [vmem:[#allocation2 + $0xe8] ss:$16 sps:$4 sm:$0xff]  }
  0x9e   :  { %967 = vmatprep.subr.bf16.mxu0 %v2551_v12  ;;  %1053 = vmatprep.subr.bf16.mxu1 %v2553_v13  ;;  %v2581_v32 = vld [vmem:[#allocation2 + $0x104] ss:$16 sps:$4 sm:$0xff]   ;;  %v2583_v33 = vld [vmem:[#allocation2 + $0x10c] ss:$16 sps:$4 sm:$0xff]   ;;  %v2585_v34 = vld [vmem:[#allocation2 + $0x100] ss:$16 sps:$4 sm:$0xff]  }
  0x9f   :  { %v2586_v35 = vld [vmem:[#allocation2 + $0x108] ss:$16 sps:$4 sm:$0xff]   ;;  %v2587_v36 = vld [vmem:[#allocation2 + $0x124] ss:$16 sps:$4 sm:$0xff]   ;;  %v2589_v37 = vld [vmem:[#allocation2 + $0x12c] ss:$16 sps:$4 sm:$0xff]  }
  0xa0   :  { %v2591_v38 = vld [vmem:[#allocation2 + $0x120] ss:$16 sps:$4 sm:$0xff]   ;;  %v2592_v39 = vld [vmem:[#allocation2 + $0x128] ss:$16 sps:$4 sm:$0xff]   ;;  %v2593_v40 = vld [vmem:[#allocation2 + $0x144] ss:$16 sps:$4 sm:$0xff]  }
  0xa1   :  { %968 = vmatpush1.bf16.msra.mxu0 %v2555_v14  ;;  %1054 = vmatpush1.bf16.msra.mxu1 %v2556_v15  ;;  %v2595_v41 = vld [vmem:[#allocation2 + $0x14c] ss:$16 sps:$4 sm:$0xff]   ;;  %v2597_v42 = vld [vmem:[#allocation2 + $0x140] ss:$16 sps:$4 sm:$0xff]   ;;  %v2598_v43 = vld [vmem:[#allocation2 + $0x148] ss:$16 sps:$4 sm:$0xff]  }
  0xa2   :  { %969 = vmatprep.subr.bf16.mxu0 %v2557_v16  ;;  %1055 = vmatprep.subr.bf16.mxu1 %v2559_v17  ;;  %v2599_v44 = vld [vmem:[#allocation2 + $0x164] ss:$16 sps:$4 sm:$0xff]   ;;  %v2601_v45 = vld [vmem:[#allocation2 + $0x16c] ss:$16 sps:$4 sm:$0xff]   ;;  %v2603_v46 = vld [vmem:[#allocation2 + $0x160] ss:$16 sps:$4 sm:$0xff]  }
  0xa3   :  { %v2604_v47 = vld [vmem:[#allocation2 + $0x168] ss:$16 sps:$4 sm:$0xff]   ;;  %v2631_v48 = vld [vmem:[%s3477_s0 + $0x4] ss:$16 sps:$4 sm:$0xff]   ;;  %v2607_v50 = vld [vmem:[#allocation2 + $0x18c] ss:$16 sps:$4 sm:$0xff]  }
  0xa4   :  { %v2605_v49 = vld [vmem:[#allocation2 + $0x184] ss:$16 sps:$4 sm:$0xff]   ;;  %993 = vmatprep.mubr.bf16.mxu0 %v2631_v48  ;;  %1079 = vmatprep.mubr.bf16.mxu1 %v2631_v48  ;;  %v2609_v51 = vld [vmem:[#allocation2 + $0x180] ss:$16 sps:$4 sm:$0xff]   ;;  %v2610_v52 = vld [vmem:[#allocation2 + $0x188] ss:$16 sps:$4 sm:$0xff]  }
  0xa5   :  { %970 = vmatpush1.bf16.msra.mxu0 %v2561_v18  ;;  %1056 = vmatpush1.bf16.msra.mxu1 %v2562_v19  ;;  %v2611_v53 = vld [vmem:[#allocation2 + $0x1a4] ss:$16 sps:$4 sm:$0xff]   ;;  %v2613_v54 = vld [vmem:[#allocation2 + $0x1ac] ss:$16 sps:$4 sm:$0xff]   ;;  %v2615_v55 = vld [vmem:[#allocation2 + $0x1a0] ss:$16 sps:$4 sm:$0xff]  }
  0xa6   :  { %971 = vmatprep.subr.bf16.mxu0 %v2563_v20  ;;  %1057 = vmatprep.subr.bf16.mxu1 %v2565_v21  ;;  %v2616_v56 = vld [vmem:[#allocation2 + $0x1a8] ss:$16 sps:$4 sm:$0xff]   ;;  %v2617_v57 = vld [vmem:[#allocation2 + $0x1c4] ss:$16 sps:$4 sm:$0xff]   ;;  %v2619_v58 = vld [vmem:[#allocation2 + $0x1cc] ss:$16 sps:$4 sm:$0xff]  }
  0xa7   :  { %v2621_v59 = vld [vmem:[#allocation2 + $0x1c0] ss:$16 sps:$4 sm:$0xff]   ;;  %v2622_v60 = vld [vmem:[#allocation2 + $0x1c8] ss:$16 sps:$4 sm:$0xff]   ;;  %v2623_v61 = vld [vmem:[#allocation2 + $0x1e4] ss:$16 sps:$4 sm:$0xff]  }
  0xa8   :  { %v2625_v62 = vld [vmem:[#allocation2 + $0x1ec] ss:$16 sps:$4 sm:$0xff]   ;;  %v2627_v63 = vld [vmem:[#allocation2 + $0x1e0] ss:$16 sps:$4 sm:$0xff]   ;;  %v2628_v0 = vld [vmem:[#allocation2 + $0x1e8] ss:$16 sps:$4 sm:$0xff]  }
  0xa9   :  { %972 = vmatpush1.bf16.msra.mxu0 %v2567_v22  ;;  %1058 = vmatpush1.bf16.msra.mxu1 %v2568_v23  ;;  %v2634_v1 = vld [vmem:[#allocation2 + $0x204] ss:$16 sps:$4 sm:$0xff]   ;;  %v2637_v2 = vld [vmem:[#allocation2 + $0x20c] ss:$16 sps:$4 sm:$0xff]   ;;  %v2629_v3 = vld [vmem:[%s3477_s0] ss:$16 sps:$4 sm:$0xff]  }
  0xaa   :  { %973 = vmatprep.subr.bf16.mxu0 %v2569_v24  ;;  %1059 = vmatprep.subr.bf16.mxu1 %v2571_v25  ;;  %v2632_v4 = vld [vmem:[#allocation2 + $0x200] ss:$16 sps:$4 sm:$0xff]   ;;  %v2635_v5 = vld [vmem:[#allocation2 + $0x208] ss:$16 sps:$4 sm:$0xff]   ;;  %v2640_v6 = vld [vmem:[#allocation2 + $0x224] ss:$16 sps:$4 sm:$0xff]  }
  0xab   :  { %v2643_v7 = vld [vmem:[#allocation2 + $0x22c] ss:$16 sps:$4 sm:$0xff]   ;;  %v2638_v8 = vld [vmem:[#allocation2 + $0x220] ss:$16 sps:$4 sm:$0xff]   ;;  %v2641_v9 = vld [vmem:[#allocation2 + $0x228] ss:$16 sps:$4 sm:$0xff]  }
  0xac   :  { %v2646_v10 = vld [vmem:[#allocation2 + $0x244] ss:$16 sps:$4 sm:$0xff]   ;;  %v2649_v11 = vld [vmem:[#allocation2 + $0x24c] ss:$16 sps:$4 sm:$0xff]   ;;  %v2644_v12 = vld [vmem:[#allocation2 + $0x240] ss:$16 sps:$4 sm:$0xff]  }
  0xad   :  { %974 = vmatpush1.bf16.msra.mxu0 %v2573_v26  ;;  %1060 = vmatpush1.bf16.msra.mxu1 %v2574_v27  ;;  %v2647_v13 = vld [vmem:[#allocation2 + $0x248] ss:$16 sps:$4 sm:$0xff]   ;;  %v2652_v14 = vld [vmem:[#allocation2 + $0x264] ss:$16 sps:$4 sm:$0xff]   ;;  %v2655_v15 = vld [vmem:[#allocation2 + $0x26c] ss:$16 sps:$4 sm:$0xff]  }
  0xae   :  { %975 = vmatprep.subr.bf16.mxu0 %v2575_v28  ;;  %1061 = vmatprep.subr.bf16.mxu1 %v2577_v29  ;;  %v2650_v16 = vld [vmem:[#allocation2 + $0x260] ss:$16 sps:$4 sm:$0xff]   ;;  %v2653_v17 = vld [vmem:[#allocation2 + $0x268] ss:$16 sps:$4 sm:$0xff]   ;;  %v2658_v18 = vld [vmem:[#allocation2 + $0x284] ss:$16 sps:$4 sm:$0xff]  }
  0xaf   :  { %v2661_v19 = vld [vmem:[#allocation2 + $0x28c] ss:$16 sps:$4 sm:$0xff]   ;;  %v2656_v20 = vld [vmem:[#allocation2 + $0x280] ss:$16 sps:$4 sm:$0xff]   ;;  %v2659_v21 = vld [vmem:[#allocation2 + $0x288] ss:$16 sps:$4 sm:$0xff]  }
  0xb0   :  { %v2664_v22 = vld [vmem:[#allocation2 + $0x2a4] ss:$16 sps:$4 sm:$0xff]   ;;  %v2667_v23 = vld [vmem:[#allocation2 + $0x2ac] ss:$16 sps:$4 sm:$0xff]   ;;  %v2662_v24 = vld [vmem:[#allocation2 + $0x2a0] ss:$16 sps:$4 sm:$0xff]  }
  0xb1   :  { %976 = vmatpush1.bf16.msra.mxu0 %v2579_v30  ;;  %1062 = vmatpush1.bf16.msra.mxu1 %v2580_v31  ;;  %v2665_v25 = vld [vmem:[#allocation2 + $0x2a8] ss:$16 sps:$4 sm:$0xff]   ;;  %v2670_v26 = vld [vmem:[#allocation2 + $0x2c4] ss:$16 sps:$4 sm:$0xff]   ;;  %v2673_v27 = vld [vmem:[#allocation2 + $0x2cc] ss:$16 sps:$4 sm:$0xff]  }
  0xb2   :  { %977 = vmatprep.subr.bf16.mxu0 %v2581_v32  ;;  %1063 = vmatprep.subr.bf16.mxu1 %v2583_v33  ;;  %v2668_v28 = vld [vmem:[#allocation2 + $0x2c0] ss:$16 sps:$4 sm:$0xff]   ;;  %v2671_v29 = vld [vmem:[#allocation2 + $0x2c8] ss:$16 sps:$4 sm:$0xff]   ;;  %v2676_v30 = vld [vmem:[#allocation2 + $0x2e4] ss:$16 sps:$4 sm:$0xff]  }
  0xb3   :  { %v2730_v31 = vld [vmem:[%s3477_s0 + $0xc] ss:$16 sps:$4 sm:$0xff]   ;;  %v2674_v33 = vld [vmem:[#allocation2 + $0x2e0] ss:$16 sps:$4 sm:$0xff]   ;;  %vm3096_vm0 = vmmov 0  }
  0xb4   :  { %v2679_v32 = vld [vmem:[#allocation2 + $0x2ec] ss:$16 sps:$4 sm:$0xff]  }
  0xb5   :  { %978 = vmatpush1.bf16.msra.mxu0 %v2585_v34  ;;  %1064 = vmatpush1.bf16.msra.mxu1 %v2586_v35  ;;  %v2677_v34 = vld [vmem:[#allocation2 + $0x2e8] ss:$16 sps:$4 sm:$0xff]   ;;  %v2682_v35 = vld [vmem:[#allocation2 + $0x304] ss:$16 sps:$4 sm:$0xff]   ;;  %v2703_v48 = vld [vmem:[#allocation2 + $0x36c] ss:$16 sps:$4 sm:$0xff]  }
  0xb6   :  { %979 = vmatprep.subr.bf16.mxu0 %v2587_v36  ;;  %1065 = vmatprep.subr.bf16.mxu1 %v2589_v37  ;;  %v2685_v36 = vld [vmem:[#allocation2 + $0x30c] ss:$16 sps:$4 sm:$0xff]   ;;  %v2680_v37 = vld [vmem:[#allocation2 + $0x300] ss:$16 sps:$4 sm:$0xff]  }
  0xb9   :  { %980 = vmatpush1.bf16.msra.mxu0 %v2591_v38  ;;  %1066 = vmatpush1.bf16.msra.mxu1 %v2592_v39  ;;  %v2683_v38 = vld [vmem:[#allocation2 + $0x308] ss:$16 sps:$4 sm:$0xff]   ;;  %v2688_v39 = vld [vmem:[#allocation2 + $0x324] ss:$16 sps:$4 sm:$0xff]  }
  0xba   :  { %981 = vmatprep.subr.bf16.mxu0 %v2593_v40  ;;  %1067 = vmatprep.subr.bf16.mxu1 %v2595_v41  ;;  %v2691_v40 = vld [vmem:[#allocation2 + $0x32c] ss:$16 sps:$4 sm:$0xff]   ;;  %v2686_v41 = vld [vmem:[#allocation2 + $0x320] ss:$16 sps:$4 sm:$0xff]  }
  0xbd   :  { %982 = vmatpush1.bf16.msra.mxu0 %v2597_v42  ;;  %1068 = vmatpush1.bf16.msra.mxu1 %v2598_v43  ;;  %v2689_v42 = vld [vmem:[#allocation2 + $0x328] ss:$16 sps:$4 sm:$0xff]   ;;  %v2694_v43 = vld [vmem:[#allocation2 + $0x344] ss:$16 sps:$4 sm:$0xff]  }
  0xbe   :  { %983 = vmatprep.subr.bf16.mxu0 %v2599_v44  ;;  %1069 = vmatprep.subr.bf16.mxu1 %v2601_v45  ;;  %v2697_v44 = vld [vmem:[#allocation2 + $0x34c] ss:$16 sps:$4 sm:$0xff]   ;;  %v2692_v45 = vld [vmem:[#allocation2 + $0x340] ss:$16 sps:$4 sm:$0xff]  }
  0xc1   :  { %984 = vmatpush1.bf16.msra.mxu0 %v2603_v46  ;;  %1070 = vmatpush1.bf16.msra.mxu1 %v2604_v47  ;;  %v2695_v46 = vld [vmem:[#allocation2 + $0x348] ss:$16 sps:$4 sm:$0xff]   ;;  %v2700_v47 = vld [vmem:[#allocation2 + $0x364] ss:$16 sps:$4 sm:$0xff]  }
  0xc2   :  { %985 = vmatprep.subr.bf16.mxu0 %v2605_v49  ;;  %1071 = vmatprep.subr.bf16.mxu1 %v2607_v50  ;;  %v2698_v49 = vld [vmem:[#allocation2 + $0x360] ss:$16 sps:$4 sm:$0xff]   ;;  %v2701_v50 = vld [vmem:[#allocation2 + $0x368] ss:$16 sps:$4 sm:$0xff]  }
  0xc5   :  { %986 = vmatpush1.bf16.msra.mxu0 %v2609_v51  ;;  %1072 = vmatpush1.bf16.msra.mxu1 %v2610_v52  ;;  %v2706_v51 = vld [vmem:[#allocation2 + $0x384] ss:$16 sps:$4 sm:$0xff]   ;;  %v2709_v52 = vld [vmem:[#allocation2 + $0x38c] ss:$16 sps:$4 sm:$0xff]  }
  0xc6   :  { %987 = vmatprep.subr.bf16.mxu0 %v2611_v53  ;;  %1073 = vmatprep.subr.bf16.mxu1 %v2613_v54  ;;  %v2704_v53 = vld [vmem:[#allocation2 + $0x380] ss:$16 sps:$4 sm:$0xff]   ;;  %v2707_v54 = vld [vmem:[#allocation2 + $0x388] ss:$16 sps:$4 sm:$0xff]  }
  0xc9   :  { %988 = vmatpush1.bf16.msra.mxu0 %v2615_v55  ;;  %1074 = vmatpush1.bf16.msra.mxu1 %v2616_v56  ;;  %v2712_v55 = vld [vmem:[#allocation2 + $0x3a4] ss:$16 sps:$4 sm:$0xff]   ;;  %v2715_v56 = vld [vmem:[#allocation2 + $0x3ac] ss:$16 sps:$4 sm:$0xff]  }
  0xca   :  { %989 = vmatprep.subr.bf16.mxu0 %v2617_v57  ;;  %1075 = vmatprep.subr.bf16.mxu1 %v2619_v58  ;;  %v2710_v57 = vld [vmem:[#allocation2 + $0x3a0] ss:$16 sps:$4 sm:$0xff]   ;;  %v2713_v58 = vld [vmem:[#allocation2 + $0x3a8] ss:$16 sps:$4 sm:$0xff]  }
  0xcd   :  { %990 = vmatpush1.bf16.msra.mxu0 %v2621_v59  ;;  %1076 = vmatpush1.bf16.msra.mxu1 %v2622_v60  ;;  %v2718_v59 = vld [vmem:[#allocation2 + $0x3c4] ss:$16 sps:$4 sm:$0xff]   ;;  %v2721_v60 = vld [vmem:[#allocation2 + $0x3cc] ss:$16 sps:$4 sm:$0xff]  }
  0xce   :  { %991 = vmatprep.subr.bf16.mxu0 %v2623_v61  ;;  %1077 = vmatprep.subr.bf16.mxu1 %v2625_v62  ;;  %v2716_v61 = vld [vmem:[#allocation2 + $0x3c0] ss:$16 sps:$4 sm:$0xff]   ;;  %v2719_v62 = vld [vmem:[#allocation2 + $0x3c8] ss:$16 sps:$4 sm:$0xff]  }
  0xd1   :  { %992 = vmatpush1.bf16.msra.mxu0 %v2627_v63  ;;  %1078 = vmatpush1.bf16.msra.mxu1 %v2628_v0  ;;  %v2724_v63 = vld [vmem:[#allocation2 + $0x3e4] ss:$16 sps:$4 sm:$0xff]   ;;  %v2727_v0 = vld [vmem:[#allocation2 + $0x3ec] ss:$16 sps:$4 sm:$0xff]  }
  0xd2   :  { %1004 = vmatprep.subr.bf16.mxu0 %v2634_v1  ;;  %1090 = vmatprep.subr.bf16.mxu1 %v2637_v2  ;;  %v2722_v1 = vld [vmem:[#allocation2 + $0x3e0] ss:$16 sps:$4 sm:$0xff]   ;;  %v2725_v2 = vld [vmem:[#allocation2 + $0x3e8] ss:$16 sps:$4 sm:$0xff]  }
  0xd4   :  { %994 = vmatmul.mubr.bf16.vlgmr.msra.gmra.mrb[0].mxu0 %v2629_v3  ;;  %1080 = vmatmul.mubr.bf16.vlgmr.msra.gmra.mrb[0].mxu1 %v2629_v3  ;;  %v2728_v3 = vld [vmem:[%s3477_s0 + $0x8] ss:$16 sps:$4 sm:$0xff]  }
  0xd5   :  { %1005 = vmatpush1.bf16.msra.mxu0 %v2632_v4  ;;  %1091 = vmatpush1.bf16.msra.mxu1 %v2635_v5  ;;  %v281_v4 = vlaneseq }
  0xd6   :  { %1006 = vmatprep.subr.bf16.mxu0 %v2640_v6  ;;  %1092 = vmatprep.subr.bf16.mxu1 %v2643_v7  ;;  %v279_v7 = vld [vmem:[%s3479_s2] sm:$0xf] }
  0xd7   :  { %1036 = vmatprep.mubr.bf16.mxu0 %v2730_v31  ;;  %1122 = vmatprep.mubr.bf16.mxu1 %v2730_v31  ;;  %v282_v5 = vshrl.u32 %v281_v4, 7 }
  0xd9   :  { %1007 = vmatpush1.bf16.msra.mxu0 %v2638_v8  ;;  %1093 = vmatpush1.bf16.msra.mxu1 %v2641_v9  ;;  %v3281_v6 = vsub.s32 0, %v282_v5  ;;  %v3286_v8 = vsub.s32 1, %v282_v5  ;;  %v3288_v9 = vsub.s32 2, %v282_v5 }
  0xda   :  { %1008 = vmatprep.subr.bf16.mxu0 %v2646_v10  ;;  %1094 = vmatprep.subr.bf16.mxu1 %v2649_v11 }
  0xdb   :  { %v284_v10 = vrot.slane %v279_v7, %v3281_v6  ;;  %v288_v11 = vrot.slane %v279_v7, %v3286_v8 }
  0xdd   :  { %1009 = vmatpush1.bf16.msra.mxu0 %v2644_v12  ;;  %1095 = vmatpush1.bf16.msra.mxu1 %v2647_v13  ;;  %v3292_v12 = vsub.s32 3, %v282_v5 }
  0xde   :  { %1010 = vmatprep.subr.bf16.mxu0 %v2652_v14  ;;  %1096 = vmatprep.subr.bf16.mxu1 %v2655_v15  ;;  %v292_v14 = vrot.slane %v279_v7, %v3288_v9 }
  0xe1   :  { %1011 = vmatpush1.bf16.msra.mxu0 %v2650_v16  ;;  %1097 = vmatpush1.bf16.msra.mxu1 %v2653_v17 }
  0xe2   :  { %1012 = vmatprep.subr.bf16.mxu0 %v2658_v18  ;;  %1098 = vmatprep.subr.bf16.mxu1 %v2661_v19 }
  0xe5   :  { %1013 = vmatpush1.bf16.msra.mxu0 %v2656_v20  ;;  %1099 = vmatpush1.bf16.msra.mxu1 %v2659_v21  ;;  %v296_v20 = vrot.slane %v279_v7, %v3292_v12 }
  0xe6   :  { %1014 = vmatprep.subr.bf16.mxu0 %v2664_v22  ;;  %1100 = vmatprep.subr.bf16.mxu1 %v2667_v23 }
  0xe9   :  { %1015 = vmatpush1.bf16.msra.mxu0 %v2662_v24  ;;  %1101 = vmatpush1.bf16.msra.mxu1 %v2665_v25 }
  0xea   :  { %1016 = vmatprep.subr.bf16.mxu0 %v2670_v26  ;;  %1102 = vmatprep.subr.bf16.mxu1 %v2673_v27 }
  0xed   :  { %1017 = vmatpush1.bf16.msra.mxu0 %v2668_v28  ;;  %1103 = vmatpush1.bf16.msra.mxu1 %v2671_v29 }
  0xee   :  { %1018 = vmatprep.subr.bf16.mxu0 %v2676_v30  ;;  %1104 = vmatprep.subr.bf16.mxu1 %v2679_v32 }
  0xf1   :  { %1019 = vmatpush1.bf16.msra.mxu0 %v2674_v33  ;;  %1105 = vmatpush1.bf16.msra.mxu1 %v2677_v34 }
  0xf2   :  { %1020 = vmatprep.subr.bf16.mxu0 %v2682_v35  ;;  %1106 = vmatprep.subr.bf16.mxu1 %v2685_v36 }
  0xf5   :  { %1021 = vmatpush1.bf16.msra.mxu0 %v2680_v37  ;;  %1107 = vmatpush1.bf16.msra.mxu1 %v2683_v38  ;;  %v2731_v37 = vld [vmem:[#allocation4] ss:$8 sps:$4 sm:$0xff]   ;;  %v2733_v38 = vld [vmem:[#allocation4 + $0x4] ss:$8 sps:$4 sm:$0xff]  }
  0xf6   :  { %1022 = vmatprep.subr.bf16.mxu0 %v2688_v39  ;;  %1108 = vmatprep.subr.bf16.mxu1 %v2691_v40  ;;  %v2736_v39 = vld [vmem:[#allocation4 + $0x14] ss:$8 sps:$4 sm:$0xff]   ;;  %v2734_v40 = vld [vmem:[#allocation4 + $0x10] ss:$8 sps:$4 sm:$0xff]  }
  0xf9   :  { %1023 = vmatpush1.bf16.msra.mxu0 %v2686_v41  ;;  %1109 = vmatpush1.bf16.msra.mxu1 %v2689_v42  ;;  %v2739_v41 = vld [vmem:[#allocation4 + $0x24] ss:$8 sps:$4 sm:$0xff]   ;;  %v2737_v42 = vld [vmem:[#allocation4 + $0x20] ss:$8 sps:$4 sm:$0xff]  }
  0xfa   :  { %1024 = vmatprep.subr.bf16.mxu0 %v2694_v43  ;;  %1110 = vmatprep.subr.bf16.mxu1 %v2697_v44  ;;  %v2742_v43 = vld [vmem:[#allocation4 + $0x34] ss:$8 sps:$4 sm:$0xff]   ;;  %v2740_v44 = vld [vmem:[#allocation4 + $0x30] ss:$8 sps:$4 sm:$0xff]  }
  0xfd   :  { %1025 = vmatpush1.bf16.msra.mxu0 %v2692_v45  ;;  %1111 = vmatpush1.bf16.msra.mxu1 %v2695_v46  ;;  %v2745_v45 = vld [vmem:[#allocation4 + $0x44] ss:$8 sps:$4 sm:$0xff]   ;;  %v2743_v46 = vld [vmem:[#allocation4 + $0x40] ss:$8 sps:$4 sm:$0xff]  }
  0xfe   :  { %1026 = vmatprep.subr.bf16.mxu0 %v2700_v47  ;;  %1112 = vmatprep.subr.bf16.mxu1 %v2703_v48 }
 0x101   :  { %1027 = vmatpush1.bf16.msra.mxu0 %v2698_v49  ;;  %1113 = vmatpush1.bf16.msra.mxu1 %v2701_v50 }
 0x102   :  { %1028 = vmatprep.subr.bf16.mxu0 %v2706_v51  ;;  %1114 = vmatprep.subr.bf16.mxu1 %v2709_v52 }
 0x105   :  { %1029 = vmatpush1.bf16.msra.mxu0 %v2704_v53  ;;  %1115 = vmatpush1.bf16.msra.mxu1 %v2707_v54 }
 0x106   :  { %1030 = vmatprep.subr.bf16.mxu0 %v2712_v55  ;;  %1116 = vmatprep.subr.bf16.mxu1 %v2715_v56 }
 0x109   :  { %1031 = vmatpush1.bf16.msra.mxu0 %v2710_v57  ;;  %1117 = vmatpush1.bf16.msra.mxu1 %v2713_v58 }
 0x10a   :  { %1032 = vmatprep.subr.bf16.mxu0 %v2718_v59  ;;  %1118 = vmatprep.subr.bf16.mxu1 %v2721_v60 }
 0x10d   :  { %1033 = vmatpush1.bf16.msra.mxu0 %v2716_v61  ;;  %1119 = vmatpush1.bf16.msra.mxu1 %v2719_v62 }
 0x10e   :  { %1034 = vmatprep.subr.bf16.mxu0 %v2724_v63  ;;  %1120 = vmatprep.subr.bf16.mxu1 %v2727_v0 }
 0x111   :  { %1035 = vmatpush1.bf16.msra.mxu0 %v2722_v1  ;;  %1121 = vmatpush1.bf16.msra.mxu1 %v2725_v2 }
 0x112   :  { %1686 = vmatprep.subr.bf16.mxu0 %v2733_v38 }
 0x114   :  { %1037 = vmatmul.mubr.bf16.vlgmr.msra.gmra.mrb[0].mxu0 %v2728_v3  ;;  %1123 = vmatmul.mubr.bf16.vlgmr.msra.gmra.mrb[0].mxu1 %v2728_v3 }
 0x115   :  { %1687 = vmatpush1.bf16.msra.mxu0 %v2731_v37 }
 0x116   :  { %1688 = vmatprep.subr.bf16.mxu0 %v2736_v39 }
 0x119   :  { %1689 = vmatpush1.bf16.msra.mxu0 %v2734_v40 }
 0x11a   :  { %1690 = vmatprep.subr.bf16.mxu0 %v2739_v41 }
 0x11d   :  { %1691 = vmatpush1.bf16.msra.mxu0 %v2737_v42 }
 0x11e   :  { %1692 = vmatprep.subr.bf16.mxu0 %v2742_v43  ;;  %v1133_v43 = vld [vmem:[%s3480_s3] sm:$0xf] }
 0x121   :  { %1693 = vmatpush1.bf16.msra.mxu0 %v2740_v44  ;;  %v1134_v44 = vld [vmem:[%s3481_s4] sm:$0xf] }
 0x122   :  { %1694 = vmatprep.subr.bf16.mxu0 %v2745_v45  ;;  %v1200_v45 = vrot.slane %v1133_v43, %v3288_v9 }
 0x125   :  { %1695 = vmatpush1.bf16.msra.mxu0 %v2743_v46  ;;  %v1204_v46 = vrot.slane %v1133_v43, %v3292_v12 }
 0x1e7   :  { %v1038_v13 = vpop.f32.mrb[0].mxu0  ;;  %v1124_v15 = vpop.f32.mrb[0].mxu1 }
 0x1e8   :  { %v2493_v16 = vadd.f32 %v1038_v13, %v284_v10  ;;  %v1040_v17 = vpop.f32.mrb[1].mxu0  ;;  %v1126_v18 = vpop.f32.mrb[1].mxu1  ;;  %v2497_v26 = vadd.f32 %v1124_v15, %v292_v14  ;;  %v2746_v15 = vld [vmem:[#allocation4 + $0x50] ss:$8 sps:$4 sm:$0xff]  }
 0x1e9   :  { %v2494_v19 = vadd.f32 %v1040_v17, %v288_v11  ;;  %v1042_v21 = vpop.f32.mrb[2].mxu0  ;;  %v1128_v22 = vpop.f32.mrb[2].mxu1  ;;  %v2498_v29 = vadd.f32 %v1126_v18, %v296_v20  ;;  %v2749_v17 = vld [vmem:[#allocation4 + $0x60] ss:$8 sps:$4 sm:$0xff]   ;;  %v2754_v18 = vld [vmem:[#allocation4 + $0x74] ss:$8 sps:$4 sm:$0xff]  }
 0x1ea   :  { %v2495_v23 = vadd.f32 %v1042_v21, %v284_v10  ;;  %v1044_v24 = vpop.f32.mrb[3].mxu0  ;;  %v1130_v25 = vpop.f32.mrb[3].mxu1  ;;  %v2499_v30 = vadd.f32 %v1128_v22, %v292_v14  ;;  %v2748_v14 = vld [vmem:[#allocation4 + $0x54] ss:$8 sps:$4 sm:$0xff]   ;;  %v2755_v21 = vld [vmem:[#allocation4 + $0x80] ss:$8 sps:$4 sm:$0xff]  }
 0x1eb   :  { %v1135_v27 = vadd.f32 %v2494_v19, %v2493_v16  ;;  %v2496_v28 = vadd.f32 %v1044_v24, %v288_v11  ;;  %v2500_v35 = vadd.f32 %v1130_v25, %v296_v20  ;;  %1696 = vmatprep.subr.bf16.mxu0 %v2748_v14  ;;  %v2757_v20 = vld [vmem:[#allocation4 + $0x84] ss:$8 sps:$4 sm:$0xff]   ;;  %v2760_v22 = vld [vmem:[#allocation4 + $0x94] ss:$8 sps:$4 sm:$0xff]   ;;  %v2761_v25 = vld [vmem:[#allocation4 + $0xa0] ss:$8 sps:$4 sm:$0xff]  }
 0x1ec   :  { %1697 = vmatpush1.bf16.msra.mxu0 %v2746_v15  ;;  %v2763_v24 = vld [vmem:[#allocation4 + $0xa4] ss:$8 sps:$4 sm:$0xff]  }
 0x1ed   :  { %v1140_v31 = vadd.f32 %v2496_v28, %v2495_v23  ;;  %v1136_v32 = vadd.f32 %v2497_v26, %v1135_v27  ;;  %v2764_v27 = vld [vmem:[#allocation4 + $0xb0] ss:$8 sps:$4 sm:$0xff]  }
 0x1ef   :  { %v1137_v33 = vadd.f32 %v2498_v29, %v1136_v32  ;;  %v1141_v34 = vadd.f32 %v2499_v30, %v1140_v31  ;;  %v2770_v31 = vld [vmem:[#allocation4 + $0xd0] ss:$8 sps:$4 sm:$0xff]   ;;  %v2775_v32 = vld [vmem:[#allocation4 + $0xe4] ss:$8 sps:$4 sm:$0xff]  }
 0x1f1   :  { %1138 = vadd.xlane.f32.xlu0 %v1137_v33  ;;  %v1142_v36 = vadd.f32 %v2500_v35, %v1141_v34  ;;  %v2773_v33 = vld [vmem:[#allocation4 + $0xe0] ss:$8 sps:$4 sm:$0xff]   ;;  %v2778_v34 = vld [vmem:[#allocation4 + $0xf4] ss:$8 sps:$4 sm:$0xff]  }
 0x1f5   :  { %1143 = vadd.xlane.f32.xlu0 %v1142_v36  ;;  %v2781_v36 = vld [vmem:[#allocation4 + $0x104] ss:$8 sps:$4 sm:$0xff]  }
 0x27e   :  { %v1139_v47 = vpop.xlane.xlu0 %1138 }
 0x27f   :  { %v1146_v48 = vmul.f32 0.001953125, %v1139_v47  ;;  %v1196_v47 = vrot.slane %v1133_v43, %v3286_v8 }
 0x281   :  { %v3296_v49 = vsub.f32 %v2493_v16, %v1146_v48  ;;  %v3298_v50 = vsub.f32 %v2494_v19, %v1146_v48  ;;  %v3300_v51 = vsub.f32 %v2497_v26, %v1146_v48  ;;  %v3302_v53 = vsub.f32 %v2498_v29, %v1146_v48  ;;  %v2751_v16 = vld [vmem:[#allocation4 + $0x64] ss:$8 sps:$4 sm:$0xff]   ;;  %v2752_v19 = vld [vmem:[#allocation4 + $0x70] ss:$8 sps:$4 sm:$0xff]   ;;  %v2766_v26 = vld [vmem:[#allocation4 + $0xb4] ss:$8 sps:$4 sm:$0xff]  }
 0x282   :  { %v1144_v52 = vpop.xlane.xlu0 %1143  ;;  %1698 = vmatprep.subr.bf16.mxu0 %v2751_v16  ;;  %v2767_v29 = vld [vmem:[#allocation4 + $0xc0] ss:$8 sps:$4 sm:$0xff]   ;;  %v1192_v48 = vrot.slane %v1133_v43, %v3281_v6 }
 0x283   :  { %v1147_v54 = vmul.f32 0.001953125, %v1144_v52  ;;  %v1156_v55 = vmul.f32 %v3296_v49, %v3296_v49  ;;  %v1157_v56 = vmul.f32 %v3298_v50, %v3298_v50  ;;  %v1158_v57 = vmul.f32 %v3300_v51, %v3300_v51  ;;  %1699 = vmatpush1.bf16.msra.mxu0 %v2749_v17 }
 0x284   :  { %v1159_v62 = vmul.f32 %v3302_v53, %v3302_v53  ;;  %1700 = vmatprep.subr.bf16.mxu0 %v2754_v18 }
 0x285   :  { %v3310_v58 = vsub.f32 %v2495_v23, %v1147_v54  ;;  %v3312_v59 = vsub.f32 %v2496_v28, %v1147_v54  ;;  %v1164_v60 = vadd.f32 %v1157_v56, %v1156_v55  ;;  %v3314_v61 = vsub.f32 %v2499_v30, %v1147_v54  ;;  %v2758_v23 = vld [vmem:[#allocation4 + $0x90] ss:$8 sps:$4 sm:$0xff]   ;;  %v2769_v28 = vld [vmem:[#allocation4 + $0xc4] ss:$8 sps:$4 sm:$0xff]   ;;  %v2772_v30 = vld [vmem:[#allocation4 + $0xd4] ss:$8 sps:$4 sm:$0xff]  }
 0x286   :  { %v3318_v0 = vsub.f32 %v2500_v35, %v1147_v54  ;;  %v2776_v35 = vld [vmem:[#allocation4 + $0xf0] ss:$8 sps:$4 sm:$0xff]   ;;  %v1225_v54 = vrot.slane %v1134_v44, %v3286_v8  ;;  %v1221_v55 = vrot.slane %v1134_v44, %v3281_v6 }
 0x287   :  { %v1165_v63 = vadd.f32 %v1164_v60, %v1158_v57  ;;  %v1160_v1 = vmul.f32 %v3310_v58, %v3310_v58  ;;  %v1161_v2 = vmul.f32 %v3312_v59, %v3312_v59  ;;  %v1162_v5 = vmul.f32 %v3314_v61, %v3314_v61  ;;  %1701 = vmatpush1.bf16.msra.mxu0 %v2752_v19 }
 0x288   :  { %v1163_v10 = vmul.f32 %v3318_v0, %v3318_v0  ;;  %1702 = vmatprep.subr.bf16.mxu0 %v2757_v20 }
 0x289   :  { %v1166_v3 = vadd.f32 %v1165_v63, %v1159_v62  ;;  %v1169_v7 = vadd.f32 %v1161_v2, %v1160_v1  ;;  %v1229_v63 = vrot.slane %v1134_v44, %v3288_v9  ;;  %v1233_v1 = vrot.slane %v1134_v44, %v3292_v12 }
 0x28b   :  { %1167 = vadd.xlane.f32.xlu1 %v1166_v3  ;;  %v1170_v11 = vadd.f32 %v1169_v7, %v1162_v5  ;;  %1703 = vmatpush1.bf16.msra.mxu0 %v2755_v21 }
 0x28c   :  { %1704 = vmatprep.subr.bf16.mxu0 %v2760_v22 }
 0x28d   :  { %v1171_v13 = vadd.f32 %v1170_v11, %v1163_v10 }
 0x28f   :  { %1172 = vadd.xlane.f32.xlu1 %v1171_v13  ;;  %1705 = vmatpush1.bf16.msra.mxu0 %v2758_v23 }
 0x290   :  { %1706 = vmatprep.subr.bf16.mxu0 %v2763_v24 }
 0x293   :  { %1707 = vmatpush1.bf16.msra.mxu0 %v2761_v25 }
 0x294   :  { %1708 = vmatprep.subr.bf16.mxu0 %v2766_v26 }
 0x297   :  { %1709 = vmatpush1.bf16.msra.mxu0 %v2764_v27 }
 0x298   :  { %1710 = vmatprep.subr.bf16.mxu0 %v2769_v28 }
 0x29b   :  { %1711 = vmatpush1.bf16.msra.mxu0 %v2767_v29 }
 0x29c   :  { %1712 = vmatprep.subr.bf16.mxu0 %v2772_v30 }
 0x29f   :  { %1713 = vmatpush1.bf16.msra.mxu0 %v2770_v31 }
 0x2a0   :  { %1714 = vmatprep.subr.bf16.mxu0 %v2775_v32 }
 0x2a3   :  { %1715 = vmatpush1.bf16.msra.mxu0 %v2773_v33 }
 0x2a4   :  { %1716 = vmatprep.subr.bf16.mxu0 %v2778_v34 }
 0x2a7   :  { %1717 = vmatpush1.bf16.msra.mxu0 %v2776_v35 }
 0x2a8   :  { %1729 = vmatprep.subr.bf16.mxu0 %v2781_v36 }
 0x318   :  { %v1168_v37 = vpop.xlane.xlu1 %1167 }
 0x319   :  { %v1174_v38 = vmul.f32 0.001953125, %v1168_v37 }
 0x31b   :  { %v1176_v39 = vadd.f32 1e-05, %v1174_v38 }
 0x31c   :  { %v1173_v40 = vpop.xlane.xlu1 %1172 }
 0x31d   :  { %2851 = vrsqrt.f32 %v1176_v39  ;;  %v1175_v41 = vmul.f32 0.001953125, %v1173_v40 }
 0x31f   :  { %v1177_v42 = vadd.f32 1e-05, %v1175_v41 }
 0x321   :  { %2853 = vrsqrt.f32 %v1177_v42 }
 0x327   :  { %v2852_v52 = vpop.eup %2851 }
 0x328   :  { %v1181_v56 = vmul.f32 %v2852_v52, %v3298_v50  ;;  %v1180_v57 = vmul.f32 %v2852_v52, %v3296_v49  ;;  %v1183_v60 = vmul.f32 %v2852_v52, %v3302_v53  ;;  %v1182_v62 = vmul.f32 %v2852_v52, %v3300_v51 }
 0x32a   :  { %v1210_v2 = vmul.f32 %v1196_v47, %v1181_v56  ;;  %v1209_v3 = vmul.f32 %v1192_v48, %v1180_v57  ;;  %v1212_v5 = vmul.f32 %v1204_v46, %v1183_v60  ;;  %v1211_v7 = vmul.f32 %v1200_v45, %v1182_v62  ;;  %v2779_v60 = vld [vmem:[#allocation4 + $0x100] ss:$8 sps:$4 sm:$0xff]  }
 0x32b   :  { %v2854_v10 = vpop.eup %2853 }
 0x32c   :  { %v1185_v11 = vmul.f32 %v2854_v10, %v3312_v59  ;;  %v1239_v13 = vadd.f32 %v1225_v54, %v1210_v2  ;;  %v1184_v50 = vmul.f32 %v2854_v10, %v3310_v58  ;;  %v1238_v14 = vadd.f32 %v1221_v55, %v1209_v3  ;;  %v2784_v3 = vld [vmem:[#allocation4 + $0x114] ss:$8 sps:$4 sm:$0xff]  }
 0x32d   :  { %v1187_v49 = vmul.f32 %v2854_v10, %v3318_v0  ;;  %v1241_v53 = vadd.f32 %v1233_v1, %v1212_v5  ;;  %v1186_v51 = vmul.f32 %v2854_v10, %v3314_v61  ;;  %v1240_v15 = vadd.f32 %v1229_v63, %v1211_v7 }
 0x32e   :  { %v1214_v9 = vmul.f32 %v1196_v47, %v1185_v11  ;;  %v1255_v16 = vmul.f32 0.70710677, %v1239_v13  ;;  %v1213_v12 = vmul.f32 %v1192_v48, %v1184_v50  ;;  %v1254_v17 = vmul.f32 0.70710677, %v1238_v14  ;;  %v2782_v11 = vld [vmem:[#allocation4 + $0x110] ss:$8 sps:$4 sm:$0xff]  }
 0x32f   :  { %v1216_v18 = vmul.f32 %v1204_v46, %v1187_v49  ;;  %v1257_v21 = vmul.f32 0.70710677, %v1241_v53  ;;  %v1215_v22 = vmul.f32 %v1200_v45, %v1186_v51  ;;  %v1256_v61 = vmul.f32 0.70710677, %v1240_v15  ;;  %v2787_v50 = vld [vmem:[#allocation4 + $0x124] ss:$8 sps:$4 sm:$0xff]  }
 0x330   :  { %v1243_v19 = vadd.f32 %v1225_v54, %v1214_v9  ;;  %2855 = verf.f32 %v1255_v16  ;;  %v1242_v20 = vadd.f32 %v1221_v55, %v1213_v12  ;;  %v1247_v31 = vmul.f32 0.5, %v1239_v13  ;;  %v2790_v49 = vld [vmem:[#allocation4 + $0x134] ss:$8 sps:$4 sm:$0xff]   ;;  %v2793_v51 = vld [vmem:[#allocation4 + $0x144] ss:$8 sps:$4 sm:$0xff]  }
 0x331   :  { %2857 = verf.f32 %v1254_v17  ;;  %v1245_v59 = vadd.f32 %v1233_v1, %v1216_v18  ;;  %v1244_v0 = vadd.f32 %v1229_v63, %v1215_v22  ;;  %v1246_v36 = vmul.f32 0.5, %v1238_v14  ;;  %v2785_v14 = vld [vmem:[#allocation4 + $0x120] ss:$8 sps:$4 sm:$0xff]   ;;  %v2796_v9 = vld [vmem:[#allocation4 + $0x154] ss:$8 sps:$4 sm:$0xff]  }
 0x332   :  { %v1259_v58 = vmul.f32 0.70710677, %v1243_v19  ;;  %v1258_v23 = vmul.f32 0.70710677, %v1242_v20  ;;  %2859 = verf.f32 %v1257_v21  ;;  %v1251_v34 = vmul.f32 0.5, %v1243_v19 }
 0x333   :  { %v1261_v24 = vmul.f32 0.70710677, %v1245_v59  ;;  %v1260_v25 = vmul.f32 0.70710677, %v1244_v0  ;;  %v1250_v39 = vmul.f32 0.5, %v1242_v20  ;;  %v1249_v41 = vmul.f32 0.5, %v1241_v53 }
 0x334   :  { %2861 = verf.f32 %v1259_v58  ;;  %v1248_v42 = vmul.f32 0.5, %v1240_v15  ;;  %v1253_v46 = vmul.f32 0.5, %v1245_v59  ;;  %v1252_v55 = vmul.f32 0.5, %v1244_v0  ;;  %v2788_v53 = vld [vmem:[#allocation4 + $0x130] ss:$8 sps:$4 sm:$0xff]  }
 0x335   :  { %2863 = verf.f32 %v1258_v23  ;;  %v2791_v15 = vld [vmem:[#allocation4 + $0x140] ss:$8 sps:$4 sm:$0xff]   ;;  %v2794_v16 = vld [vmem:[#allocation4 + $0x150] ss:$8 sps:$4 sm:$0xff]   ;;  %v2799_v12 = vld [vmem:[#allocation4 + $0x164] ss:$8 sps:$4 sm:$0xff]  }
 0x336   :  { %2865 = verf.f32 %v1261_v24  ;;  %v2797_v17 = vld [vmem:[#allocation4 + $0x160] ss:$8 sps:$4 sm:$0xff]   ;;  %v2802_v18 = vld [vmem:[#allocation4 + $0x174] ss:$8 sps:$4 sm:$0xff]   ;;  %v2800_v19 = vld [vmem:[#allocation4 + $0x170] ss:$8 sps:$4 sm:$0xff]  }
 0x337   :  { %2867 = verf.f32 %v1256_v61  ;;  %v2805_v20 = vld [vmem:[#allocation4 + $0x184] ss:$8 sps:$4 sm:$0xff]   ;;  %v2803_v21 = vld [vmem:[#allocation4 + $0x180] ss:$8 sps:$4 sm:$0xff]   ;;  %v2808_v59 = vld [vmem:[#allocation4 + $0x194] ss:$8 sps:$4 sm:$0xff]  }
 0x338   :  { %2869 = verf.f32 %v1260_v25  ;;  %v2806_v22 = vld [vmem:[#allocation4 + $0x190] ss:$8 sps:$4 sm:$0xff]   ;;  %v2811_v58 = vld [vmem:[#allocation4 + $0x1a4] ss:$8 sps:$4 sm:$0xff]   ;;  %v2809_v23 = vld [vmem:[#allocation4 + $0x1a0] ss:$8 sps:$4 sm:$0xff]  }
 0x339   :  { %v2814_v24 = vld [vmem:[#allocation4 + $0x1b4] ss:$8 sps:$4 sm:$0xff]   ;;  %v2812_v0 = vld [vmem:[#allocation4 + $0x1b0] ss:$8 sps:$4 sm:$0xff]   ;;  %v2817_v61 = vld [vmem:[#allocation4 + $0x1c4] ss:$8 sps:$4 sm:$0xff]  }
 0x33a   :  { %v2856_v26 = vpop.eup %2855  ;;  %v2815_v25 = vld [vmem:[#allocation4 + $0x1c0] ss:$8 sps:$4 sm:$0xff]  }
 0x33b   :  { %v2858_v27 = vpop.eup %2857  ;;  %v1271_v29 = vadd.f32 1.0, %v2856_v26  ;;  %v2820_v26 = vld [vmem:[#allocation4 + $0x1d4] ss:$8 sps:$4 sm:$0xff]  }
 0x33c   :  { %v2860_v28 = vpop.eup %2859  ;;  %v1270_v32 = vadd.f32 1.0, %v2858_v27  ;;  %v2818_v27 = vld [vmem:[#allocation4 + $0x1d0] ss:$8 sps:$4 sm:$0xff]  }
 0x33d   :  { %v1273_v37 = vadd.f32 1.0, %v2860_v28  ;;  %v1279_v44 = vmul.f32 %v1271_v29, %v1247_v31  ;;  %v2823_v28 = vld [vmem:[#allocation4 + $0x1e4] ss:$8 sps:$4 sm:$0xff]   ;;  %v2821_v29 = vld [vmem:[#allocation4 + $0x1e0] ss:$8 sps:$4 sm:$0xff]  }
 0x33e   :  { %v2862_v30 = vpop.eup %2861  ;;  %v1278_v52 = vmul.f32 %v1270_v32, %v1246_v36  ;;  %v2824_v31 = vld [vmem:[#allocation4 + $0x1f0] ss:$8 sps:$4 sm:$0xff]  }
 0x33f   :  { %v2864_v33 = vpop.eup %2863  ;;  %v1275_v35 = vadd.f32 1.0, %v2862_v30  ;;  %v1281_v62 = vmul.f32 %v1273_v37, %v1249_v41  ;;  %v2826_v30 = vld [vmem:[#allocation4 + $0x1f4] ss:$8 sps:$4 sm:$0xff]   ;;  %v1354_v32 = vld [vmem:[%s3483_s6] sm:$0x3] }
 0x340   :  { %v2866_v38 = vpop.eup %2865  ;;  %v1274_v40 = vadd.f32 1.0, %v2864_v33  ;;  %v1359_v33 = vrot.slane %v1354_v32, %v3281_v6 }
 0x341   :  { %v2868_v43 = vpop.eup %2867  ;;  %v1283_v45 = vmul.f32 %v1275_v35, %v1251_v34  ;;  %v1277_v47 = vadd.f32 1.0, %v2866_v38  ;;  %v1363_v34 = vrot.slane %v1354_v32, %v3286_v8 }
 0x342   :  { %v2870_v48 = vpop.eup %2869  ;;  %v1282_v54 = vmul.f32 %v1274_v40, %v1250_v39  ;;  %v1272_v56 = vadd.f32 1.0, %v2868_v43 }
 0x343   :  { %v1287_v57 = vpack.c.bf16 %v1283_v45, %v1279_v44  ;;  %v1285_v63 = vmul.f32 %v1277_v47, %v1253_v46  ;;  %v1276_v1 = vadd.f32 1.0, %v2870_v48 }
 0x344   :  { %v1286_v2 = vpack.c.bf16 %v1282_v54, %v1278_v52  ;;  %v3350_v7 = vmul.f32 %v1272_v56, %v1248_v42 }
 0x345   :  { %1718 = vmatprep.mubr.bf16.mxu0 %v1287_v57  ;;  %v1289_v5 = vpack.c.bf16 %v1285_v63, %v1281_v62  ;;  %v3352_v10 = vmul.f32 %v1276_v1, %v1252_v55 }
 0x346   :  { %1719 = vmatmul.mubr.bf16.vlgmr.msra.gmra.mrb[4].mxu0 %v1286_v2 }
 0x347   :  { %1730 = vmatpush1.bf16.msra.mxu0 %v2779_v60  ;;  %1761 = vmatprep.mubr.bf16.mxu0 %v1289_v5  ;;  %v1288_v13 = vpack.c.bf16 %v3352_v10, %v3350_v7  ;;  %v2828_v5 = vld [vmem:[%s3486_s9] sm:$0xff]   ;;  %v2829_v7 = vld [vmem:[%s3486_s9 + $0x48] sm:$0xff]  }
 0x348   :  { %1731 = vmatprep.subr.bf16.mxu0 %v2784_v3  ;;  %v2827_v3 = vld [vmem:[%s3486_s9 + $0x40] sm:$0xff]   ;;  %v2830_v10 = vld [vmem:[%s3486_s9 + $0x8] sm:$0xff]  }
 0x349   :  { %2442 = vmatprep.subr.bf16.mxu1 %v2827_v3 }
 0x34a   :  { %2443 = vmatpush3.bf16.msra.mxu1 %v2828_v5  ;;  %v2843_v5 = vld [vmem:[#allocation10] sm:$0xff]  }
 0x34b   :  { %1732 = vmatpush1.bf16.msra.mxu0 %v2782_v11  ;;  %v2831_v11 = vld [vmem:[%s3486_s9 + $0x50] sm:$0xff]   ;;  %2444 = vmatprep.subr.bf16.mxu1 %v2829_v7 }
 0x34c   :  { %1733 = vmatprep.subr.bf16.mxu0 %v2787_v50  ;;  %v2833_v50 = vld [vmem:[%s3486_s9 + $0x58] sm:$0xff]  }
 0x34e   :  { %2445 = vmatpush3.bf16.msra.mxu1 %v2830_v10  ;;  %v2844_v10 = vld [vmem:[#allocation10 + $0x8] sm:$0xff]  }
 0x34f   :  { %1734 = vmatpush1.bf16.msra.mxu0 %v2785_v14  ;;  %2446 = vmatprep.subr.bf16.mxu1 %v2831_v11  ;;  %v2834_v14 = vld [vmem:[%s3486_s9 + $0x18] sm:$0xff]   ;;  %v2845_v11 = vld [vmem:[#allocation10 + $0x10] sm:$0xff]  }
 0x350   :  { %1735 = vmatprep.subr.bf16.mxu0 %v2790_v49  ;;  %v2835_v49 = vld [vmem:[%s3486_s9 + $0x60] sm:$0xff]  }
 0x353   :  { %1736 = vmatpush1.bf16.msra.mxu0 %v2788_v53  ;;  %v2836_v53 = vld [vmem:[%s3486_s9 + $0x20] sm:$0xff]  }
 0x354   :  { %1737 = vmatprep.subr.bf16.mxu0 %v2793_v51  ;;  %v2837_v51 = vld [vmem:[%s3486_s9 + $0x68] sm:$0xff]  }
 0x357   :  { %1738 = vmatpush1.bf16.msra.mxu0 %v2791_v15  ;;  %v2838_v15 = vld [vmem:[%s3486_s9 + $0x28] sm:$0xff]  }
 0x358   :  { %1739 = vmatprep.subr.bf16.mxu0 %v2796_v9  ;;  %v2839_v9 = vld [vmem:[%s3486_s9 + $0x70] sm:$0xff]  }
 0x35b   :  { %1740 = vmatpush1.bf16.msra.mxu0 %v2794_v16  ;;  %v2840_v16 = vld [vmem:[%s3486_s9 + $0x30] sm:$0xff]  }
 0x35c   :  { %1741 = vmatprep.subr.bf16.mxu0 %v2799_v12  ;;  %v2841_v12 = vld [vmem:[%s3486_s9 + $0x78] sm:$0xff]  }
 0x35f   :  { %1742 = vmatpush1.bf16.msra.mxu0 %v2797_v17  ;;  %v2842_v17 = vld [vmem:[%s3486_s9 + $0x38] sm:$0xff]  }
 0x360   :  { %1743 = vmatprep.subr.bf16.mxu0 %v2802_v18  ;;  %v3095_v18 = vmov 0.0  }
 0x363   :  { %1744 = vmatpush1.bf16.msra.mxu0 %v2800_v19 }
 0x364   :  { %1745 = vmatprep.subr.bf16.mxu0 %v2805_v20 }
 0x367   :  { %1746 = vmatpush1.bf16.msra.mxu0 %v2803_v21 }
 0x368   :  { %1747 = vmatprep.subr.bf16.mxu0 %v2808_v59 }
 0x36b   :  { %1748 = vmatpush1.bf16.msra.mxu0 %v2806_v22 }
 0x36c   :  { %1749 = vmatprep.subr.bf16.mxu0 %v2811_v58 }
 0x36f   :  { %1750 = vmatpush1.bf16.msra.mxu0 %v2809_v23  ;;  %v1772_v23 = vld [vmem:[#allocation6] sm:$0x3] }
 0x370   :  { %1751 = vmatprep.subr.bf16.mxu0 %v2814_v24  ;;  %v1773_v24 = vld [vmem:[#allocation7] sm:$0x3] }
 0x373   :  { %1752 = vmatpush1.bf16.msra.mxu0 %v2812_v0  ;;  %v1811_v0 = vrot.slane %v1772_v23, %v3281_v6 }
 0x374   :  { %1753 = vmatprep.subr.bf16.mxu0 %v2817_v61  ;;  %v1815_v61 = vrot.slane %v1772_v23, %v3286_v8 }
 0x377   :  { %1754 = vmatpush1.bf16.msra.mxu0 %v2815_v25 }
 0x378   :  { %1755 = vmatprep.subr.bf16.mxu0 %v2820_v26 }
 0x37b   :  { %1756 = vmatpush1.bf16.msra.mxu0 %v2818_v27 }
 0x37c   :  { %1757 = vmatprep.subr.bf16.mxu0 %v2823_v28  ;;  %v1826_v28 = vrot.slane %v1773_v24, %v3281_v6 }
 0x37f   :  { %1758 = vmatpush1.bf16.msra.mxu0 %v2821_v29  ;;  %v1830_v29 = vrot.slane %v1773_v24, %v3286_v8 }
 0x380   :  { %1759 = vmatprep.subr.bf16.mxu0 %v2826_v30 }
 0x383   :  { %1760 = vmatpush1.bf16.msra.mxu0 %v2824_v31 }
 0x386   :  { %1762 = vmatmul.mubr.bf16.vlgmr.msra.gmra.mrb[4].mxu0 %v1288_v13  ;;  %v2832_v13 = vld [vmem:[%s3486_s9 + $0x10] sm:$0xff]  }
 0x387   :  { %2447 = vmatpush3.bf16.msra.mxu1 %v2832_v13  ;;  %v2846_v13 = vld [vmem:[#allocation10 + $0x18] sm:$0xff]  }
 0x388   :  { %2448 = vmatprep.subr.bf16.mxu1 %v2833_v50  ;;  %v2847_v50 = vld [vmem:[#allocation10 + $0x20] sm:$0xff]  }
 0x38b   :  { %2449 = vmatpush3.bf16.msra.mxu1 %v2834_v14  ;;  %v2848_v14 = vld [vmem:[#allocation10 + $0x28] sm:$0xff]  }
 0x38c   :  { %2450 = vmatprep.subr.bf16.mxu1 %v2835_v49  ;;  %v2849_v49 = vld [vmem:[#allocation10 + $0x30] sm:$0xff]  }
 0x38f   :  { %2451 = vmatpush3.bf16.msra.mxu1 %v2836_v53  ;;  %v2850_v53 = vld [vmem:[#allocation10 + $0x38] sm:$0xff]  }
 0x390   :  { %2452 = vmatprep.subr.bf16.mxu1 %v2837_v51 }
 0x393   :  { %2453 = vmatpush3.bf16.msra.mxu1 %v2838_v15 }
 0x394   :  { %2454 = vmatprep.subr.bf16.mxu1 %v2839_v9 }
 0x397   :  { %2455 = vmatpush3.bf16.msra.mxu1 %v2840_v16 }
 0x398   :  { %2456 = vmatprep.subr.bf16.mxu1 %v2841_v12  ;;  %v2415_v12 = vld [vmem:[#allocation9] ss:$0 sm:$0xff] }
 0x39b   :  { %2457 = vmatpush3.bf16.msra.mxu1 %v2842_v17 }
 0x39c   :  { %2473 = vmatprep.subr.bf16.mxu1 %v3095_v18 }
 0x459   :  { %v1763_v35 = vpop.f32.mrb[4].mxu0 }
 0x45a   :  { %v2501_v36 = vadd.f32 %v1763_v35, %v1359_v33  ;;  %v1765_v37 = vpop.f32.mrb[5].mxu0 }
 0x45b   :  { %v2502_v38 = vadd.f32 %v1765_v37, %v1363_v34  ;;  %v1767_v39 = vpop.f32.mrb[6].mxu0 }
 0x45c   :  { %v2503_v40 = vadd.f32 %v1767_v39, %v1359_v33  ;;  %v1769_v41 = vpop.f32.mrb[7].mxu0 }
 0x45d   :  { %v2504_v42 = vadd.f32 %v1769_v41, %v1363_v34  ;;  %v1774_v43 = vadd.f32 %v2502_v38, %v2501_v36 }
 0x45f   :  { %1775 = vadd.xlane.f32.xlu0 %v1774_v43  ;;  %v1777_v44 = vadd.f32 %v2504_v42, %v2503_v40 }
 0x461   :  { %1778 = vadd.xlane.f32.xlu1 %v1777_v44 }
 0x4ec   :  { %v1776_v45 = vpop.xlane.xlu0 %1775 }
 0x4ed   :  { %v1781_v46 = vmul.f32 0.00390625, %v1776_v45 }
 0x4ee   :  { %v1779_v47 = vpop.xlane.xlu1 %1778 }
 0x4ef   :  { %v1783_v48 = vsub.f32 %v2501_v36, %v1781_v46  ;;  %v1784_v52 = vsub.f32 %v2502_v38, %v1781_v46  ;;  %v1782_v54 = vmul.f32 0.00390625, %v1779_v47 }
 0x4f1   :  { %v3361_v55 = vsub.f32 %v2503_v40, %v1782_v54  ;;  %v3363_v56 = vsub.f32 %v2504_v42, %v1782_v54  ;;  %v1787_v57 = vmul.f32 %v1783_v48, %v1783_v48  ;;  %v1788_v60 = vmul.f32 %v1784_v52, %v1784_v52 }
 0x4f3   :  { %v1791_v62 = vadd.f32 %v1788_v60, %v1787_v57  ;;  %v1789_v63 = vmul.f32 %v3361_v55, %v3361_v55  ;;  %v1790_v1 = vmul.f32 %v3363_v56, %v3363_v56 }
 0x4f5   :  { %1792 = vadd.xlane.f32.xlu0 %v1791_v62  ;;  %v1794_v2 = vadd.f32 %v1790_v1, %v1789_v63 }
 0x4f7   :  { %1795 = vadd.xlane.f32.xlu1 %v1794_v2 }
 0x582   :  { %v1793_v19 = vpop.xlane.xlu0 %1792 }
 0x583   :  { %v1797_v20 = vmul.f32 0.00390625, %v1793_v19 }
 0x584   :  { %v1796_v21 = vpop.xlane.xlu1 %1795 }
 0x585   :  { %v1799_v59 = vadd.f32 1e-05, %v1797_v20  ;;  %v1798_v22 = vmul.f32 0.00390625, %v1796_v21 }
 0x587   :  { %2871 = vrsqrt.f32 %v1799_v59  ;;  %v1800_v58 = vadd.f32 1e-05, %v1798_v22  ;;  %v3433_v22 = vand.u32 127, %v281_v4 }
 0x589   :  { %2873 = vrsqrt.f32 %v1800_v58  ;;  %vm2165_vm1 = vcmp.ge.s32.totalorder %v3433_v22, 68  ;;  %vm2166_vm2 = vcmp.lt.s32.totalorder %v3433_v22, 100  ;;  %vm2151_vm4 = vcmp.ge.s32.totalorder %v3433_v22, 100 }
 0x58a   :  { %vm3439_vm3 = vmand %vm2165_vm1, %vm2166_vm2  ;;  %vm2152_vm5 = vcmp.lt.s32.totalorder %v3433_v22, 116  ;;  %vm2150_vm6 = vcmp.lt.s32.totalorder %v3433_v22, 4  ;;  %vm2199_vm9 = vcmp.lt.s32.totalorder %v3433_v22, 68 }
 0x58b   :  { %vm2153_vm7 = vmand %vm2151_vm4, %vm2152_vm5 }
 0x58c   :  { %vm2154_vm8 = vmor %vm2150_vm6, %vm2153_vm7 }
 0x591   :  { %v2872_v25 = vpop.eup %2871 }
 0x592   :  { %v1803_v26 = vmul.f32 %v2872_v25, %v1783_v48  ;;  %v1804_v27 = vmul.f32 %v2872_v25, %v1784_v52 }
 0x593   :  { %v2874_v30 = vpop.eup %2873 }
 0x594   :  { %v1818_v31 = vmul.f32 %v1811_v0, %v1803_v26  ;;  %v1805_v32 = vmul.f32 %v2874_v30, %v3361_v55  ;;  %v1806_v33 = vmul.f32 %v2874_v30, %v3363_v56  ;;  %v1819_v34 = vmul.f32 %v1815_v61, %v1804_v27 }
 0x596   :  { %v1820_v35 = vmul.f32 %v1811_v0, %v1805_v32  ;;  %v1821_v36 = vmul.f32 %v1815_v61, %v1806_v33  ;;  %v1834_v37 = vadd.f32 %v1830_v29, %v1819_v34  ;;  %v1833_v38 = vadd.f32 %v1826_v28, %v1818_v31 }
 0x598   :  { %v1836_v39 = vadd.f32 %v1830_v29, %v1821_v36  ;;  %v1842_v40 = vmul.f32 0.70710677, %v1834_v37  ;;  %v1835_v41 = vadd.f32 %v1826_v28, %v1820_v35  ;;  %v1841_v42 = vmul.f32 0.70710677, %v1833_v38 }
 0x599   :  { %v1838_v52 = vmul.f32 0.5, %v1834_v37  ;;  %v1837_v56 = vmul.f32 0.5, %v1833_v38 }
 0x59a   :  { %v1844_v43 = vmul.f32 0.70710677, %v1836_v39  ;;  %2875 = verf.f32 %v1842_v40  ;;  %v1843_v6 = vmul.f32 0.70710677, %v1835_v41  ;;  %v1840_v54 = vmul.f32 0.5, %v1836_v39 }
 0x59b   :  { %2877 = verf.f32 %v1841_v42  ;;  %v1839_v57 = vmul.f32 0.5, %v1835_v41 }
 0x59c   :  { %2879 = verf.f32 %v1844_v43 }
 0x59d   :  { %2881 = verf.f32 %v1843_v6 }
 0x5a4   :  { %v2876_v8 = vpop.eup %2875 }
 0x5a5   :  { %v2878_v44 = vpop.eup %2877  ;;  %v1850_v45 = vadd.f32 1.0, %v2876_v8 }
 0x5a6   :  { %v2880_v46 = vpop.eup %2879  ;;  %v1849_v47 = vadd.f32 1.0, %v2878_v44 }
 0x5a7   :  { %v2882_v48 = vpop.eup %2881  ;;  %v1852_v55 = vadd.f32 1.0, %v2880_v46  ;;  %v1854_v62 = vmul.f32 %v1850_v45, %v1838_v52 }
 0x5a8   :  { %v1851_v60 = vadd.f32 1.0, %v2882_v48  ;;  %v1853_v1 = vmul.f32 %v1849_v47, %v1837_v56  ;;  %v2441_v48 = vld [vmem:[#allocation13] ss:$0 sm:$0xff] }
 0x5a9   :  { %v1856_v63 = vmul.f32 %v1852_v55, %v1840_v54 }
 0x5aa   :  { %v1855_v2 = vmul.f32 %v1851_v60, %v1839_v57 }
 0x5ab   :  { %v1858_v3 = vpack.c.bf16 %v1856_v63, %v1854_v62 }
 0x5ac   :  { %v1857_v7 = vpack.c.bf16 %v1855_v2, %v1853_v1 }
 0x5ad   :  { %2026 = vmatprep.mubr.bf16.mxu1 %v1858_v3 }
 0x5ae   :  { %2027 = vmatmul.mubr.bf16.vlgmr.msra.gmra.mrb[4].mxu1 %v1857_v7 }
 0x5af   :  { %2474 = vmatpush3.bf16.msra.mxu1 %v2843_v5  ;;  %2489 = vmatprep.mubr.msk.bf16.mxu1 %vm3096_vm0, %v3095_v18 }
 0x5b0   :  { %2475 = vmatprep.subr.bf16.mxu1 %v3095_v18 }
 0x5b3   :  { %2476 = vmatpush3.bf16.msra.mxu1 %v2844_v10 }
 0x5b4   :  { %2477 = vmatprep.subr.bf16.mxu1 %v3095_v18 }
 0x5b7   :  { %2478 = vmatpush3.bf16.msra.mxu1 %v2845_v11 }
 0x5b8   :  { %2479 = vmatprep.subr.bf16.mxu1 %v3095_v18 }
 0x5bb   :  { %2480 = vmatpush3.bf16.msra.mxu1 %v2846_v13 }
 0x5bc   :  { %2481 = vmatprep.subr.bf16.mxu1 %v3095_v18 }
 0x5bf   :  { %2482 = vmatpush3.bf16.msra.mxu1 %v2847_v50 }
 0x5c0   :  { %2483 = vmatprep.subr.bf16.mxu1 %v3095_v18 }
 0x5c3   :  { %2484 = vmatpush3.bf16.msra.mxu1 %v2848_v14 }
 0x5c4   :  { %2485 = vmatprep.subr.bf16.mxu1 %v3095_v18 }
 0x5c7   :  { %2486 = vmatpush3.bf16.msra.mxu1 %v2849_v49 }
 0x5c8   :  { %2487 = vmatprep.subr.bf16.mxu1 %v3095_v18  ;;  %v2432_v18 = vld [vmem:[#allocation12] ss:$0 sm:$0xff] }
 0x5cb   :  { %2488 = vmatpush3.bf16.msra.mxu1 %v2850_v53 }
 0x681   :  { %v2458_v51 = vpop.f32.mrb[4].mxu1 }
 0x682   :  { %v2459_v15 = vpop.f32.mrb[5].mxu1 }
 0x683   :  { %v2460_v9 = vadd.f32 %v2459_v15, %v2458_v51  ;;  %v2461_v16 = vpop.f32.mrb[6].mxu1 }
 0x684   :  { %v2462_v17 = vpop.f32.mrb[7].mxu1 }
 0x685   :  { %v2463_v19 = vadd.f32 %v2462_v17, %v2461_v16  ;;  %v2029_v20 = vadd.f32 %v2460_v9, %v2415_v12 }
 0x687   :  { %v2032_v21 = vadd.f32 %v2463_v19, %v2415_v12 }
 0x689   :  { %v2035_v59 = vpack.c.bf16 %v2032_v21, %v2029_v20 }
 0x68b   :  { %2490 = vmatmul.mubr.bf16.vlgmr.msra.gmra.mrb[8].mxu1 %v2035_v59 }
 0x75e   :  { %v2141_v58 = vpop.f32.mrb[8].mxu1 }
 0x75f   :  { %v2142_v24 = vadd.f32 %v2432_v18, %v2141_v58  ;;  %v2491_v0 = vpop.f32.mrb[9].mxu1 }
 0x760   :  { %v2144_v61 = vpop.f32.mrb[10].mxu1 }
 0x761   :  { %v2145_v25 = vadd.f32 %v2432_v18, %v2144_v61  ;;  %v2492_v26 = vpop.f32.mrb[11].mxu1  ;;  %v2168_v4 = vsel %vm3439_vm3, %v2142_v24, -1e+30  ;;  %v2155_v38 = vmul.f32 0.5, %v2142_v24 }
 0x762   :  { %2170 = vmax.xlane.f32.xlu0 %v2168_v4 }
 0x763   :  { %v2169_v27 = vsel %vm3439_vm3, %v2145_v25, -1e+30  ;;  %v2156_v39 = vmul.f32 0.5, %v2145_v25  ;;  %v2157_v40 = vsel %vm2154_vm8, %v2155_v38, %v2142_v24 }
 0x764   :  { %2172 = vmax.xlane.f32.xlu1 %v2169_v27 }
 0x765   :  { %v2158_v41 = vsel %vm2154_vm8, %v2156_v39, %v2145_v25 }
 0x7ef   :  { %v2171_v28 = vpop.xlane.xlu0 %2170 }
 0x7f0   :  { %v2174_v29 = vsub.f32 %v2142_v24, %v2171_v28 }
 0x7f1   :  { %v2173_v30 = vpop.xlane.xlu1 %2172 }
 0x7f2   :  { %v2176_v31 = vmul.f32 1.442695, %v2174_v29  ;;  %v2175_v32 = vsub.f32 %v2145_v25, %v2173_v30 }
 0x7f4   :  { %2883 = vpow2.f32 %v2176_v31  ;;  %v2178_v33 = vmul.f32 1.442695, %v2175_v32 }
 0x7f6   :  { %2885 = vpow2.f32 %v2178_v33 }
 0x7f7   :  { %2887 = vtanh.f32 %v2157_v40 }
 0x7f8   :  { %2889 = vtanh.f32 %v2158_v41 }
 0x7fe   :  { %v2884_v34 = vpop.eup %2883 }
 0x7ff   :  { %v2180_v35 = vsel %vm3439_vm3, %v2884_v34, 0.0 }
 0x800   :  { %v2886_v36 = vpop.eup %2885  ;;  %2182 = vadd.xlane.f32.xlu0 %v2180_v35 }
 0x801   :  { %v2181_v37 = vsel %vm3439_vm3, %v2886_v36, 0.0  ;;  %v2888_v43 = vpop.eup %2887 }
 0x802   :  { %2184 = vadd.xlane.f32.xlu1 %v2181_v37  ;;  %v2890_v8 = vpop.eup %2889  ;;  %v2161_v44 = vadd.f32 1.0, %v2888_v43 }
 0x803   :  { %v2162_v45 = vadd.f32 1.0, %v2890_v8 }
 0x804   :  { %v2163_v46 = vmul.f32 0.5, %v2161_v44 }
 0x805   :  { %v2164_v52 = vmul.f32 0.5, %v2162_v45 }
 0x806   :  { %v2200_v56 = vsel %vm2152_vm5, %v2163_v46, 0.0  ;;  %v2197_v57 = vmul.f32 %v2441_v48, %v2163_v46 }
 0x807   :  { %v2201_v1 = vsel %vm2152_vm5, %v2164_v52, 0.0  ;;  %v2198_v3 = vmul.f32 %v2441_v48, %v2164_v52 }
 0x88d   :  { %v2183_v42 = vpop.xlane.xlu0 %2182 }
 0x88e   :  { %2891 = vrcp.f32 %v2183_v42 }
 0x88f   :  { %v2185_v6 = vpop.xlane.xlu1 %2184 }
 0x890   :  { %2893 = vrcp.f32 %v2185_v6 }
 0x898   :  { %v2892_v47 = vpop.eup %2891 }
 0x899   :  { %v2187_v54 = vmul.f32 %v2892_v47, %v2180_v35 }
 0x89a   :  { %v2894_v55 = vpop.eup %2893 }
 0x89b   :  { %v2202_v60 = vsel %vm2166_vm2, %v2187_v54, %v2200_v56  ;;  %v2189_v62 = vmul.f32 %v2894_v55, %v2181_v37 }
 0x89c   :  { %v2204_v63 = vsel %vm2199_vm9, %v2888_v43, %v2202_v60 }
 0x89d   :  { %v2206_v2 = vsel %vm2150_vm6, %v2197_v57, %v2204_v63  ;;  %v2203_v5 = vsel %vm2166_vm2, %v2189_v62, %v2201_v1 }
 0x89e   :  { %2208 = vst [vmem:[%s3491_s14] sm:$0xff] %v2206_v2  ;;  %v2205_v7 = vsel %vm2199_vm9, %v2890_v8, %v2203_v5 }
 0x89f   :  { %v2207_v10 = vsel %vm2150_vm6, %v2198_v3, %v2205_v7 }
 0x8a0   :  { %2209 = vst [vmem:[%s3491_s14 + $0x8] sm:$0xff] %v2207_v10 }
 0x8a1   :  { %2214 = vsyncpa [#allocation3], 1 }
 0x8a2   :  { %2215 = vsyncpa [#allocation5], 1 }
 0x8a3   :  { %2216 = vsyncpa [#allocation8], 1 }
 0x8a4   :  { %2217 = vsyncpa [#allocation11], 1 }
 0x8a5   :  { %2218 = vsyncpa [#allocation14], 1 }

</bundles_post_ra>
